<compile_context>
chip_gen: v7x
topology: tpu7x:2x2x1
jax: 0.10.0
libtpu: 0.0.40
codegen_flags: <defaults>
</compile_context>

<pallas_src>
import math

import jax
import jax.numpy as jnp
from jax.experimental import pallas as pl
from jax.experimental.pallas import tpu as pltpu

EMB = 64                 # emb_size
HEADS = 8                # MCGraphEncoder hard-codes heads=8 for MCGraphAttention
FWD_EXP = 4
HIDDEN = FWD_EXP * EMB
HEAD_DIM = EMB // HEADS
LN_EPS = 1e-5


def _erf(x):
    # Abramowitz & Stegun 7.1.26 polynomial approximation of erf (|err| <= 1.5e-7).
    # Exact divide (review: the approx reciprocal defeats the polynomial's accuracy).
    a1, a2, a3, a4, a5 = 0.254829592, -0.284496736, 1.421413741, -1.453152027, 1.061405429
    p = 0.3275911
    s = jnp.where(x >= 0.0, 1.0, -1.0)
    ax = jnp.abs(x)
    t = 1.0 / (1.0 + p * ax)
    poly = ((((a5 * t + a4) * t + a3) * t + a2) * t + a1) * t
    return s * (1.0 - poly * jnp.exp(-ax * ax))


def _gelu_exact(x):
    return 0.5 * x * (1.0 + _erf(x * 0.7071067811865476))


def _graph_layer_norm(x, w, b):
    # torch_geometric LayerNorm, mode='graph', batch=None:
    #   single mean / population std over ALL elements, then per-feature affine.
    # Two-pass statistics + exact scalar divide (review correctness feedback).
    mean = jnp.mean(x, keepdims=True)                      # (1, 1) f32
    d = x - mean
    var = jnp.mean(d * d, keepdims=True)
    inv = 1.0 / (jnp.sqrt(var) + LN_EPS)                   # exact; runs once per call
    return d * inv * w + b                                 # w, b: (1, C)


def _encoder_kernel(nodes_ref, edge_ref, mask_ref,
                    wq_ref, wk_ref, wv_ref, wp_ref,
                    kexp_ref, vexp_ref, kmask_ref, vmask_ref,
                    n1w_ref, n1b_ref, n2w_ref, n2b_ref,
                    w1_ref, b1_ref, w2_ref, b2_ref,
                    out_ref):
    g = pl.program_id(0)
    Bb, T, C = nodes_ref.shape
    M = T * HEADS                                          # packed lane width (128 at T=16)
    R = Bb * T
    f32, bf16 = jnp.float32, jnp.bfloat16

    # ---------------- attention over a chunk of Bb graphs ----------------------------------
    nodes = nodes_ref[...]                                 # (Bb, T, C) f32, ORIGINAL nodes
    x = (nodes * mask_ref[...]).reshape(R, C).astype(bf16)  # masked_fill(mask == False, 0)

    # Q/K/V projections on Bb*T flattened rows (heads**-0.5 pre-folded into wq in wrapper).
    q = jnp.dot(x, wq_ref[...], preferred_element_type=f32)           # (R, C)
    k = jnp.dot(x, wk_ref[...], preferred_element_type=f32)
    v = jnp.dot(x, wv_ref[...], preferred_element_type=f32)

    # Pack K block-diagonally over heads:  Kbd[b, c, key*H+h] = K[b, key, c] * (c//hd == h)
    kT = jnp.swapaxes(k.reshape(Bb, T, C), 1, 2)                       # (Bb, C, T)
    kex = jnp.dot(kT.reshape(Bb * C, T).astype(bf16), kexp_ref[...],
                  preferred_element_type=f32)                          # (Bb*C, M) expand keys
    kbd = (kex.reshape(Bb, C, M) * kmask_ref[...].astype(f32)).astype(bf16)

    # all-head scores in ONE full-width contraction per graph: (T, C) @ (C, H*T)
    s = jnp.einsum('bqc,bcm->bqm', q.reshape(Bb, T, C).astype(bf16), kbd,
                   preferred_element_type=f32).reshape(R, M)

    # edge scale 3*e + 1, expanded to the packed lane layout with the same key expander.
    e = jnp.dot(edge_ref[...].reshape(R, T), kexp_ref[...],
                preferred_element_type=f32)                            # (R, M)
    s = s * (3.0 * e + 1.0)

    # per-head max via a lane roll tree (head = lane % HEADS, so shifts that are multiples
    # of HEADS rotate keys cyclically *within* each head; max is idempotent, so the cyclic
    # over-coverage is exact for any T).
    mx = s
    win = 1
    while win < T:
        mx = jnp.maximum(mx, pltpu.roll(mx, HEADS * win, 1))
        win *= 2
    p = jnp.exp(s - mx)                                                # (R, M), lane-dense
    pbf = p.astype(bf16)

    # exact per-head softmax denominators, already expanded to feature lanes:
    #   (p @ vmask)[r, c] = sum_key p[r, key*H + c//hd]
    den = jnp.dot(pbf, vmask_ref[...], preferred_element_type=f32)     # (R, C)

    # Pack V block-diagonally: Vbd[b, key*H+h, c] = V[b, key, c] * (c//hd == h)
    vex = jnp.einsum('bmk,bkc->bmc',
                     jnp.broadcast_to(vexp_ref[...], (Bb, M, T)),
                     v.reshape(Bb, T, C).astype(bf16),
                     preferred_element_type=f32)                       # (Bb, M, C)
    vbd = (vex * vmask_ref[...].astype(f32)).astype(bf16)

    # P @ V for all heads in ONE contraction-(H*T) matmul per graph; the result is already
    # the head-concatenated (T, C) layout -> no per-head reassembly, no VMEM staging tile.
    ctx = jnp.einsum('bqm,bmc->bqc', pbf.reshape(Bb, T, M), vbd,
                     preferred_element_type=f32).reshape(R, C)
    ctx = ctx * pl.reciprocal(den, approx=True)            # hot path; bf16 noise dominates

    attn = jnp.dot(ctx.astype(bf16), wp_ref[...], preferred_element_type=f32)

    # residual uses the ORIGINAL (unmasked) nodes; staged directly into the resident output
    # block (constant index_map) -> no extra resident (B,T,C) scratch.
    out_ref[pl.ds(g * Bb, Bb)] = nodes + attn.reshape(Bb, T, C)

    # ---------------- final step: global LayerNorms + feed-forward over all graphs ---------
    # TODO(synk): a two-pass global LayerNorm (sum/sumsq accumulated per step, apply in a
    # second streamed pass) would allow a "parallel" chunk axis (v7x megacore) and overlap
    # this tail with DMA instead of running it serially after the last step.
    @pl.when(g == pl.num_programs(0) - 1)
    def _():
        B = out_ref.shape[0]
        r1 = out_ref[...].reshape(B * T, C)
        dc = _graph_layer_norm(r1, n1w_ref[...], n1b_ref[...])

        h1 = jnp.dot(dc.astype(bf16), w1_ref[...],
                     preferred_element_type=f32) + b1_ref[...]
        h1 = _gelu_exact(h1)
        ff = jnp.dot(h1.astype(bf16), w2_ref[...],
                     preferred_element_type=f32) + b2_ref[...]
        # TODO(synk): training-mode dropout not implemented (eval-mode identity).

        outf = _graph_layer_norm(ff + dc, n2w_ref[...], n2b_ref[...])
        out_ref[...] = outf.reshape(B, T, C)


def _pick_batch_block(B, T):
    # Largest divisor of B whose chunk keeps per-step packed temporaries modest
    # (<= 256 rows per step and Bb <= 8 keeps the (Bb, C, H*T) / (Bb, H*T, C) buffers small
    # on every generation, including v7x's 64 MiB VMEM).
    cap = max(1, min(B, max(1, 256 // T), 8))
    return max(d for d in range(1, cap + 1) if B % d == 0)


def _vmem_limit_bytes(B, T, C, Bb):
    # Real working set is a couple of MiB at these shapes; request that (with generous
    # headroom) instead of the whole chip (review: 64 MiB == all of v7x's physical VMEM).
    M = T * HEADS
    resident = B * T * C * 4                                           # output accumulator
    weights = (4 * C * C + C * HIDDEN + HIDDEN * C
               + T * M + M * T + C * M + M * C) * 2 \
              + (4 * C + HIDDEN + C) * 4                               # bf16 weights + f32 vecs
    streamed = 2 * Bb * T * (C * 4 + T * 2 + 4)                        # double-buffered inputs
    temps = Bb * (6 * T * M + 2 * C * M + 2 * M * C + 10 * T * C) * 4 \
            + B * T * (2 * HIDDEN + 6 * C) * 4                         # in-kernel temporaries
    return int(max(2 * (resident + weights + streamed + temps), 16 * 1024 * 1024))


def mc_graph_encoder(nodes, edge_index, mask, params, *, batch_block=None):
    """nodes (B,T,C) f32, edge_index (B,T,T) adjacency, mask (B,T) f32 {0,1}."""
    B, T, C = nodes.shape
    assert C == EMB, "kernel is specialized to emb_size=64"
    M = T * HEADS
    Bb = batch_block or _pick_batch_block(B, T)
    assert B % Bb == 0

    mask3 = mask.reshape(B, T, 1).astype(jnp.float32)       # glue: mask.view(B, T, 1)
    edge_bf = edge_index.astype(jnp.bfloat16)               # 0/1 adjacency is exact in bf16

    # One-time weight prep (pure glue): pre-transpose to (in, out), cast MXU operands to
    # bf16 (accumulation stays f32), fold heads**-0.5 into the Q projection columns.
    wq_t = (params['wq'].T * (HEADS ** -0.5)).astype(jnp.bfloat16)     # (C, C)
    wk_t = params['wk'].T.astype(jnp.bfloat16)
    wv_t = params['wv'].T.astype(jnp.bfloat16)
    wp_t = params['wp'].T.astype(jnp.bfloat16)
    w1_t = params['w1'].T.astype(jnp.bfloat16)                          # (C, HIDDEN)
    w2_t = params['w2'].T.astype(jnp.bfloat16)                          # (HIDDEN, C)

    # Constant packing helpers (head-interleaved lane layout: lane m = key*HEADS + head).
    lane = jnp.arange(M)
    kexp = (jnp.arange(T)[:, None] == (lane[None, :] // HEADS)).astype(jnp.bfloat16)  # (T, M)
    vexp = kexp.T                                                                      # (M, T)
    kmask = ((jnp.arange(C)[:, None] // HEAD_DIM)
             == (lane[None, :] % HEADS)).astype(jnp.bfloat16)                          # (C, M)
    vmask = kmask.T                                                                    # (M, C)

    args = (nodes.astype(jnp.float32), edge_bf, mask3,
            wq_t, wk_t, wv_t, wp_t,
            kexp, vexp, kmask, vmask,
            params['n1w'], params['n1b'], params['n2w'], params['n2b'],
            w1_t, params['b1'], w2_t, params['b2'])

    def full_spec(shape):
        zero = (0,) * len(shape)
        return pl.BlockSpec(shape, lambda g: zero)           # resident, fetched once

    grid_spec = pltpu.PrefetchScalarGridSpec(
        num_scalar_prefetch=0,
        grid=(B // Bb,),
        in_specs=[
            pl.BlockSpec((Bb, T, C), lambda g: (g, 0, 0)),   # nodes (streamed per chunk)
            pl.BlockSpec((Bb, T, T), lambda g: (g, 0, 0)),   # edge  (streamed, bf16)
            pl.BlockSpec((Bb, T, 1), lambda g: (g, 0, 0)),   # mask  (streamed per chunk)
            full_spec((C, C)), full_spec((C, C)),            # wq, wk
            full_spec((C, C)), full_spec((C, C)),            # wv, wp
            full_spec((T, M)), full_spec((M, T)),            # key expanders
            full_spec((C, M)), full_spec((M, C)),            # head block-diagonal masks
            full_spec((1, C)), full_spec((1, C)),            # norm1 w, b
            full_spec((1, C)), full_spec((1, C)),            # norm2 w, b
            full_spec((C, HIDDEN)), full_spec((1, HIDDEN)),  # FF linear 1
            full_spec((HIDDEN, C)), full_spec((1, C)),       # FF linear 2
        ],
        out_specs=pl.BlockSpec((B, T, C), lambda g: (0, 0, 0)),   # resident accumulator
    )
    return pl.pallas_call(
        _encoder_kernel,
        out_shape=jax.ShapeDtypeStruct((B, T, C), jnp.float32),
        grid_spec=grid_spec,
        compiler_params=pltpu.CompilerParams(
            dimension_semantics=("arbitrary",),              # global LayerNorm couples chunks
            vmem_limit_bytes=_vmem_limit_bytes(B, T, C, Bb),
        ),
    )(*args)


def init_params(key):
    """Deterministic, PyTorch-default-style initialization (uniform(+-1/sqrt(fan_in)))."""
    ks = jax.random.split(key, 8)

    def lin_w(k, out_f, in_f):
        bound = 1.0 / math.sqrt(in_f)
        return jax.random.uniform(k, (out_f, in_f), jnp.float32, -bound, bound)

    def lin_b(k, out_f, in_f):
        bound = 1.0 / math.sqrt(in_f)
        return jax.random.uniform(k, (1, out_f), jnp.float32, -bound, bound)

    return dict(
        wk=lin_w(ks[0], EMB, EMB), wq=lin_w(ks[1], EMB, EMB),
        wv=lin_w(ks[2], EMB, EMB), wp=lin_w(ks[3], EMB, EMB),
        n1w=jnp.ones((1, EMB), jnp.float32), n1b=jnp.zeros((1, EMB), jnp.float32),
        n2w=jnp.ones((1, EMB), jnp.float32), n2b=jnp.zeros((1, EMB), jnp.float32),
        w1=lin_w(ks[4], HIDDEN, EMB), b1=lin_b(ks[5], HIDDEN, EMB),
        w2=lin_w(ks[6], EMB, HIDDEN), b2=lin_b(ks[7], EMB, HIDDEN),
    )


if __name__ == "__main__":
    key = jax.random.PRNGKey(0)
    kp, kn, ke = jax.random.split(key, 3)
    B, T = 2, 16

    params = init_params(kp)
    nodes = jax.random.normal(kn, (B, T, EMB), jnp.float32)
    edge_index = (jax.random.uniform(ke, (B, T, T)) < 0.3).astype(jnp.float32)
    lengths = jnp.array([T, T - 4])
    mask = (jnp.arange(T)[None, :] < lengths[:, None]).astype(jnp.float32)

    out = mc_graph_encoder(nodes, edge_index, mask, params)
    jax.block_until_ready(out)
    assert out.shape == (B, T, EMB) and out.dtype == jnp.float32
    assert bool(jnp.all(jnp.isfinite(out)))
    print("KERNEL_OK")
</pallas_src>

<mosaic_0001>
module attributes {stable_mosaic.version = 11 : i64} {
  func.func @_encoder_kernel(%arg0: i32, %arg1: memref<2x16x64xf32, #tpu.memory_space<vmem>>, %arg2: memref<2x16x16xbf16, #tpu.memory_space<vmem>>, %arg3: memref<2x16x1xf32, #tpu.memory_space<vmem>>, %arg4: memref<64x64xbf16, #tpu.memory_space<vmem>>, %arg5: memref<64x64xbf16, #tpu.memory_space<vmem>>, %arg6: memref<64x64xbf16, #tpu.memory_space<vmem>>, %arg7: memref<64x64xbf16, #tpu.memory_space<vmem>>, %arg8: memref<16x128xbf16, #tpu.memory_space<vmem>>, %arg9: memref<128x16xbf16, #tpu.memory_space<vmem>>, %arg10: memref<64x128xbf16, #tpu.memory_space<vmem>>, %arg11: memref<128x64xbf16, #tpu.memory_space<vmem>>, %arg12: memref<1x64xf32, #tpu.memory_space<vmem>>, %arg13: memref<1x64xf32, #tpu.memory_space<vmem>>, %arg14: memref<1x64xf32, #tpu.memory_space<vmem>>, %arg15: memref<1x64xf32, #tpu.memory_space<vmem>>, %arg16: memref<64x256xbf16, #tpu.memory_space<vmem>>, %arg17: memref<1x256xf32, #tpu.memory_space<vmem>>, %arg18: memref<256x64xbf16, #tpu.memory_space<vmem>>, %arg19: memref<1x64xf32, #tpu.memory_space<vmem>>, %arg20: memref<2x16x64xf32, #tpu.memory_space<vmem>>) attributes {dimension_semantics = [#tpu.dimension_semantics<arbitrary>], iteration_bounds = array<i64: 1>, scalar_prefetch = 0 : i64, scratch_operands = 0 : i64, tpu.core_type = #tpu.core_type<tc>, window_params = [{transform_indices = @transform_0, window_bounds = array<i64: 2, 16, 64>}, {transform_indices = @transform_1, window_bounds = array<i64: 2, 16, 16>}, {transform_indices = @transform_2, window_bounds = array<i64: 2, 16, 1>}, {pipeline_mode = #tpu.pipeline_mode<synchronous>, transform_indices = @transform_3, window_bounds = array<i64: 64, 64>}, {pipeline_mode = #tpu.pipeline_mode<synchronous>, transform_indices = @transform_4, window_bounds = array<i64: 64, 64>}, {pipeline_mode = #tpu.pipeline_mode<synchronous>, transform_indices = @transform_5, window_bounds = array<i64: 64, 64>}, {pipeline_mode = #tpu.pipeline_mode<synchronous>, transform_indices = @transform_6, window_bounds = array<i64: 64, 64>}, {pipeline_mode = #tpu.pipeline_mode<synchronous>, transform_indices = @transform_7, window_bounds = array<i64: 16, 128>}, {pipeline_mode = #tpu.pipeline_mode<synchronous>, transform_indices = @transform_8, window_bounds = array<i64: 128, 16>}, {pipeline_mode = #tpu.pipeline_mode<synchronous>, transform_indices = @transform_9, window_bounds = array<i64: 64, 128>}, {pipeline_mode = #tpu.pipeline_mode<synchronous>, transform_indices = @transform_10, window_bounds = array<i64: 128, 64>}, {pipeline_mode = #tpu.pipeline_mode<synchronous>, transform_indices = @transform_11, window_bounds = array<i64: 1, 64>}, {pipeline_mode = #tpu.pipeline_mode<synchronous>, transform_indices = @transform_12, window_bounds = array<i64: 1, 64>}, {pipeline_mode = #tpu.pipeline_mode<synchronous>, transform_indices = @transform_13, window_bounds = array<i64: 1, 64>}, {pipeline_mode = #tpu.pipeline_mode<synchronous>, transform_indices = @transform_14, window_bounds = array<i64: 1, 64>}, {pipeline_mode = #tpu.pipeline_mode<synchronous>, transform_indices = @transform_15, window_bounds = array<i64: 64, 256>}, {pipeline_mode = #tpu.pipeline_mode<synchronous>, transform_indices = @transform_16, window_bounds = array<i64: 1, 256>}, {pipeline_mode = #tpu.pipeline_mode<synchronous>, transform_indices = @transform_17, window_bounds = array<i64: 256, 64>}, {pipeline_mode = #tpu.pipeline_mode<synchronous>, transform_indices = @transform_18, window_bounds = array<i64: 1, 64>}, {pipeline_mode = #tpu.pipeline_mode<synchronous>, transform_indices = @transform_19, window_bounds = array<i64: 2, 16, 64>}]} {
    %c0 = arith.constant 0 : index
    %c0_0 = arith.constant 0 : index
    %c0_1 = arith.constant 0 : index
    %0 = vector.load %arg1[%c0, %c0_0, %c0_1] : memref<2x16x64xf32, #tpu.memory_space<vmem>>, vector<2x16x64xf32>
    %c0_2 = arith.constant 0 : index
    %c0_3 = arith.constant 0 : index
    %c0_4 = arith.constant 0 : index
    %1 = vector.load %arg3[%c0_2, %c0_3, %c0_4] : memref<2x16x1xf32, #tpu.memory_space<vmem>>, vector<2x16x1xf32>
    %2 = vector.broadcast %1 : vector<2x16x1xf32> to vector<2x16x64xf32>
    %3 = arith.mulf %0, %2 : vector<2x16x64xf32>
    %4 = vector.shape_cast %3 : vector<2x16x64xf32> to vector<32x64xf32>
    %5 = arith.truncf %4 : vector<32x64xf32> to vector<32x64xbf16>
    %c0_5 = arith.constant 0 : index
    %c0_6 = arith.constant 0 : index
    %6 = vector.load %arg4[%c0_5, %c0_6] : memref<64x64xbf16, #tpu.memory_space<vmem>>, vector<64x64xbf16>
    %cst = arith.constant dense<0.000000e+00> : vector<32x64xf32>
    %7 = tpu.matmul %5, %6, %cst {dimension_numbers = #tpu.dot_dimension_numbers<[1], [0], [0], [1], [0, 0, 1, 1], [], []>} : vector<32x64xbf16>, vector<64x64xbf16>, vector<32x64xf32> -> vector<32x64xf32>
    %c0_7 = arith.constant 0 : index
    %c0_8 = arith.constant 0 : index
    %8 = vector.load %arg5[%c0_7, %c0_8] : memref<64x64xbf16, #tpu.memory_space<vmem>>, vector<64x64xbf16>
    %cst_9 = arith.constant dense<0.000000e+00> : vector<32x64xf32>
    %9 = tpu.matmul %5, %8, %cst_9 {dimension_numbers = #tpu.dot_dimension_numbers<[1], [0], [0], [1], [0, 0, 1, 1], [], []>} : vector<32x64xbf16>, vector<64x64xbf16>, vector<32x64xf32> -> vector<32x64xf32>
    %c0_10 = arith.constant 0 : index
    %c0_11 = arith.constant 0 : index
    %10 = vector.load %arg6[%c0_10, %c0_11] : memref<64x64xbf16, #tpu.memory_space<vmem>>, vector<64x64xbf16>
    %cst_12 = arith.constant dense<0.000000e+00> : vector<32x64xf32>
    %11 = tpu.matmul %5, %10, %cst_12 {dimension_numbers = #tpu.dot_dimension_numbers<[1], [0], [0], [1], [0, 0, 1, 1], [], []>} : vector<32x64xbf16>, vector<64x64xbf16>, vector<32x64xf32> -> vector<32x64xf32>
    %12 = vector.shape_cast %9 : vector<32x64xf32> to vector<2x16x64xf32>
    %13 = tpu.transpose %12, [0, 2, 1] : vector<2x16x64xf32> -> vector<2x64x16xf32>
    %14 = vector.shape_cast %13 : vector<2x64x16xf32> to vector<128x16xf32>
    %15 = arith.truncf %14 : vector<128x16xf32> to vector<128x16xbf16>
    %c0_13 = arith.constant 0 : index
    %c0_14 = arith.constant 0 : index
    %16 = vector.load %arg8[%c0_13, %c0_14] : memref<16x128xbf16, #tpu.memory_space<vmem>>, vector<16x128xbf16>
    %cst_15 = arith.constant dense<0.000000e+00> : vector<128x128xf32>
    %17 = tpu.matmul %15, %16, %cst_15 {dimension_numbers = #tpu.dot_dimension_numbers<[1], [0], [0], [1], [0, 0, 1, 1], [], []>} : vector<128x16xbf16>, vector<16x128xbf16>, vector<128x128xf32> -> vector<128x128xf32>
    %18 = vector.shape_cast %17 : vector<128x128xf32> to vector<2x64x128xf32>
    %c0_16 = arith.constant 0 : index
    %c0_17 = arith.constant 0 : index
    %19 = vector.load %arg10[%c0_16, %c0_17] : memref<64x128xbf16, #tpu.memory_space<vmem>>, vector<64x128xbf16>
    %20 = arith.extf %19 : vector<64x128xbf16> to vector<64x128xf32>
    %21 = vector.shape_cast %20 : vector<64x128xf32> to vector<1x64x128xf32>
    %22 = vector.broadcast %21 : vector<1x64x128xf32> to vector<2x64x128xf32>
    %23 = arith.mulf %18, %22 : vector<2x64x128xf32>
    %24 = arith.truncf %23 : vector<2x64x128xf32> to vector<2x64x128xbf16>
    %25 = vector.shape_cast %7 : vector<32x64xf32> to vector<2x16x64xf32>
    %26 = arith.truncf %25 : vector<2x16x64xf32> to vector<2x16x64xbf16>
    "tpu.trace_start"() <{level = 10 : i32, message = "bqc,bcm->bqm"}> : () -> ()
    %cst_18 = arith.constant dense<0.000000e+00> : vector<2x16x128xf32>
    %27 = tpu.matmul %26, %24, %cst_18 {dimension_numbers = #tpu.dot_dimension_numbers<[2], [1], [1], [2], [0, 0, 0, 1, 1, 2], [0], [0]>} : vector<2x16x64xbf16>, vector<2x64x128xbf16>, vector<2x16x128xf32> -> vector<2x16x128xf32>
    "tpu.trace_stop"() : () -> ()
    %28 = vector.shape_cast %27 : vector<2x16x128xf32> to vector<32x128xf32>
    %c0_19 = arith.constant 0 : index
    %c0_20 = arith.constant 0 : index
    %c0_21 = arith.constant 0 : index
    %29 = vector.load %arg2[%c0_19, %c0_20, %c0_21] : memref<2x16x16xbf16, #tpu.memory_space<vmem>>, vector<2x16x16xbf16>
    %30 = vector.shape_cast %29 : vector<2x16x16xbf16> to vector<32x16xbf16>
    %c0_22 = arith.constant 0 : index
    %c0_23 = arith.constant 0 : index
    %31 = vector.load %arg8[%c0_22, %c0_23] : memref<16x128xbf16, #tpu.memory_space<vmem>>, vector<16x128xbf16>
    %cst_24 = arith.constant dense<0.000000e+00> : vector<32x128xf32>
    %32 = tpu.matmul %30, %31, %cst_24 {dimension_numbers = #tpu.dot_dimension_numbers<[1], [0], [0], [1], [0, 0, 1, 1], [], []>} : vector<32x16xbf16>, vector<16x128xbf16>, vector<32x128xf32> -> vector<32x128xf32>
    %cst_25 = arith.constant 3.000000e+00 : f32
    %33 = vector.broadcast %cst_25 : f32 to vector<32x128xf32>
    %34 = arith.mulf %33, %32 : vector<32x128xf32>
    %cst_26 = arith.constant 1.000000e+00 : f32
    %35 = vector.broadcast %cst_26 : f32 to vector<32x128xf32>
    %36 = arith.addf %34, %35 : vector<32x128xf32>
    %37 = arith.mulf %28, %36 : vector<32x128xf32>
    %c8_i32 = arith.constant 8 : i32
    %38 = tpu.dynamic_rotate %37 by %c8_i32 dim 1 : vector<32x128xf32>, i32 -> vector<32x128xf32>
    %39 = arith.maximumf %37, %38 : vector<32x128xf32>
    %c16_i32 = arith.constant 16 : i32
    %40 = tpu.dynamic_rotate %39 by %c16_i32 dim 1 : vector<32x128xf32>, i32 -> vector<32x128xf32>
    %41 = arith.maximumf %39, %40 : vector<32x128xf32>
    %c32_i32 = arith.constant 32 : i32
    %42 = tpu.dynamic_rotate %41 by %c32_i32 dim 1 : vector<32x128xf32>, i32 -> vector<32x128xf32>
    %43 = arith.maximumf %41, %42 : vector<32x128xf32>
    %c64_i32 = arith.constant 64 : i32
    %44 = tpu.dynamic_rotate %43 by %c64_i32 dim 1 : vector<32x128xf32>, i32 -> vector<32x128xf32>
    %45 = arith.maximumf %43, %44 : vector<32x128xf32>
    %46 = arith.subf %37, %45 : vector<32x128xf32>
    %47 = math.exp %46 : vector<32x128xf32>
    %48 = arith.truncf %47 : vector<32x128xf32> to vector<32x128xbf16>
    %c0_27 = arith.constant 0 : index
    %c0_28 = arith.constant 0 : index
    %49 = vector.load %arg11[%c0_27, %c0_28] : memref<128x64xbf16, #tpu.memory_space<vmem>>, vector<128x64xbf16>
    %cst_29 = arith.constant dense<0.000000e+00> : vector<32x64xf32>
    %50 = tpu.matmul %48, %49, %cst_29 {dimension_numbers = #tpu.dot_dimension_numbers<[1], [0], [0], [1], [0, 0, 1, 1], [], []>} : vector<32x128xbf16>, vector<128x64xbf16>, vector<32x64xf32> -> vector<32x64xf32>
    %c0_30 = arith.constant 0 : index
    %c0_31 = arith.constant 0 : index
    %51 = vector.load %arg9[%c0_30, %c0_31] : memref<128x16xbf16, #tpu.memory_space<vmem>>, vector<128x16xbf16>
    %52 = vector.shape_cast %51 : vector<128x16xbf16> to vector<1x128x16xbf16>
    %53 = vector.broadcast %52 : vector<1x128x16xbf16> to vector<2x128x16xbf16>
    %54 = vector.shape_cast %11 : vector<32x64xf32> to vector<2x16x64xf32>
    %55 = arith.truncf %54 : vector<2x16x64xf32> to vector<2x16x64xbf16>
    "tpu.trace_start"() <{level = 10 : i32, message = "bmk,bkc->bmc"}> : () -> ()
    %cst_32 = arith.constant dense<0.000000e+00> : vector<2x128x64xf32>
    %56 = tpu.matmul %53, %55, %cst_32 {dimension_numbers = #tpu.dot_dimension_numbers<[2], [1], [1], [2], [0, 0, 0, 1, 1, 2], [0], [0]>} : vector<2x128x16xbf16>, vector<2x16x64xbf16>, vector<2x128x64xf32> -> vector<2x128x64xf32>
    "tpu.trace_stop"() : () -> ()
    %c0_33 = arith.constant 0 : index
    %c0_34 = arith.constant 0 : index
    %57 = vector.load %arg11[%c0_33, %c0_34] : memref<128x64xbf16, #tpu.memory_space<vmem>>, vector<128x64xbf16>
    %58 = arith.extf %57 : vector<128x64xbf16> to vector<128x64xf32>
    %59 = vector.shape_cast %58 : vector<128x64xf32> to vector<1x128x64xf32>
    %60 = vector.broadcast %59 : vector<1x128x64xf32> to vector<2x128x64xf32>
    %61 = arith.mulf %56, %60 : vector<2x128x64xf32>
    %62 = arith.truncf %61 : vector<2x128x64xf32> to vector<2x128x64xbf16>
    %63 = vector.shape_cast %48 : vector<32x128xbf16> to vector<2x16x128xbf16>
    "tpu.trace_start"() <{level = 10 : i32, message = "bqm,bmc->bqc"}> : () -> ()
    %cst_35 = arith.constant dense<0.000000e+00> : vector<2x16x64xf32>
    %64 = tpu.matmul %63, %62, %cst_35 {dimension_numbers = #tpu.dot_dimension_numbers<[2], [1], [1], [2], [0, 0, 0, 1, 1, 2], [0], [0]>} : vector<2x16x128xbf16>, vector<2x128x64xbf16>, vector<2x16x64xf32> -> vector<2x16x64xf32>
    "tpu.trace_stop"() : () -> ()
    %65 = vector.shape_cast %64 : vector<2x16x64xf32> to vector<32x64xf32>
    %66 = tpu.reciprocal %50 {approx = true} : vector<32x64xf32> -> vector<32x64xf32>
    %67 = arith.mulf %65, %66 : vector<32x64xf32>
    %68 = arith.truncf %67 : vector<32x64xf32> to vector<32x64xbf16>
    %c0_36 = arith.constant 0 : index
    %c0_37 = arith.constant 0 : index
    %69 = vector.load %arg7[%c0_36, %c0_37] : memref<64x64xbf16, #tpu.memory_space<vmem>>, vector<64x64xbf16>
    %cst_38 = arith.constant dense<0.000000e+00> : vector<32x64xf32>
    %70 = tpu.matmul %68, %69, %cst_38 {dimension_numbers = #tpu.dot_dimension_numbers<[1], [0], [0], [1], [0, 0, 1, 1], [], []>} : vector<32x64xbf16>, vector<64x64xbf16>, vector<32x64xf32> -> vector<32x64xf32>
    %71 = vector.shape_cast %70 : vector<32x64xf32> to vector<2x16x64xf32>
    %72 = arith.addf %0, %71 : vector<2x16x64xf32>
    %c2_i32 = arith.constant 2 : i32
    %73 = arith.muli %arg0, %c2_i32 : i32
    %74 = arith.index_cast %73 : i32 to index
    %c0_39 = arith.constant 0 : index
    %c0_40 = arith.constant 0 : index
    %75 = vector.load %arg20[%74, %c0_39, %c0_40] : memref<2x16x64xf32, #tpu.memory_space<vmem>>, vector<2x16x64xf32>
    tpu.vector_store %arg20[%74, %c0_39, %c0_40], %72 {strides = array<i32>} : memref<2x16x64xf32, #tpu.memory_space<vmem>>, vector<2x16x64xf32>,
    %c0_i32 = arith.constant 0 : i32
    %76 = arith.cmpi eq, %arg0, %c0_i32 : i32
    %77 = arith.extui %76 : i1 to i32
    %c0_i32_41 = arith.constant 0 : i32
    %78 = arith.cmpi ne, %77, %c0_i32_41 : i32
    scf.if %78 {
      %c0_42 = arith.constant 0 : index
      %c0_43 = arith.constant 0 : index
      %c0_44 = arith.constant 0 : index
      %79 = vector.load %arg20[%c0_42, %c0_43, %c0_44] : memref<2x16x64xf32, #tpu.memory_space<vmem>>, vector<2x16x64xf32>
      %80 = vector.shape_cast %79 : vector<2x16x64xf32> to vector<32x64xf32>
      %c0_45 = arith.constant 0 : index
      %c0_46 = arith.constant 0 : index
      %81 = vector.load %arg12[%c0_45, %c0_46] : memref<1x64xf32, #tpu.memory_space<vmem>>, vector<1x64xf32>
      %c0_47 = arith.constant 0 : index
      %c0_48 = arith.constant 0 : index
      %82 = vector.load %arg13[%c0_47, %c0_48] : memref<1x64xf32, #tpu.memory_space<vmem>>, vector<1x64xf32>
      %83 = vector.shape_cast %80 : vector<32x64xf32> to vector<1x32x64xf32>
      %cst_49 = arith.constant dense<0.000000e+00> : vector<1xf32>
      %84 = vector.multi_reduction <add>, %83, %cst_49 [1, 2] : vector<1x32x64xf32> to vector<1xf32>
      %85 = vector.shape_cast %84 : vector<1xf32> to vector<1x1x1xf32>
      %86 = vector.extract %85[0, 0, 0] : f32 from vector<1x1x1xf32>
      %87 = vector.broadcast %86 : f32 to vector<1x1xf32>
      %cst_50 = arith.constant 2.048000e+03 : f32
      %88 = vector.broadcast %cst_50 : f32 to vector<1x1xf32>
      %89 = arith.divf %87, %88 : vector<1x1xf32>
      %90 = vector.broadcast %89 : vector<1x1xf32> to vector<32x64xf32>
      %91 = arith.subf %80, %90 : vector<32x64xf32>
      %92 = arith.mulf %91, %91 : vector<32x64xf32>
      %93 = vector.shape_cast %92 : vector<32x64xf32> to vector<1x32x64xf32>
      %cst_51 = arith.constant dense<0.000000e+00> : vector<1xf32>
      %94 = vector.multi_reduction <add>, %93, %cst_51 [1, 2] : vector<1x32x64xf32> to vector<1xf32>
      %95 = vector.shape_cast %94 : vector<1xf32> to vector<1x1x1xf32>
      %96 = vector.extract %95[0, 0, 0] : f32 from vector<1x1x1xf32>
      %97 = vector.broadcast %96 : f32 to vector<1x1xf32>
      %cst_52 = arith.constant 2.048000e+03 : f32
      %98 = vector.broadcast %cst_52 : f32 to vector<1x1xf32>
      %99 = arith.divf %97, %98 : vector<1x1xf32>
      %100 = math.sqrt %99 : vector<1x1xf32>
      %cst_53 = arith.constant 9.99999974E-6 : f32
      %101 = vector.broadcast %cst_53 : f32 to vector<1x1xf32>
      %102 = arith.addf %100, %101 : vector<1x1xf32>
      %cst_54 = arith.constant 1.000000e+00 : f32
      %103 = vector.broadcast %cst_54 : f32 to vector<1x1xf32>
      %104 = arith.divf %103, %102 : vector<1x1xf32>
      %105 = vector.broadcast %104 : vector<1x1xf32> to vector<32x64xf32>
      %106 = arith.mulf %91, %105 : vector<32x64xf32>
      %107 = vector.broadcast %81 : vector<1x64xf32> to vector<32x64xf32>
      %108 = arith.mulf %106, %107 : vector<32x64xf32>
      %109 = vector.broadcast %82 : vector<1x64xf32> to vector<32x64xf32>
      %110 = arith.addf %108, %109 : vector<32x64xf32>
      %111 = arith.truncf %110 : vector<32x64xf32> to vector<32x64xbf16>
      %c0_55 = arith.constant 0 : index
      %c0_56 = arith.constant 0 : index
      %112 = vector.load %arg16[%c0_55, %c0_56] : memref<64x256xbf16, #tpu.memory_space<vmem>>, vector<64x256xbf16>
      %cst_57 = arith.constant dense<0.000000e+00> : vector<32x256xf32>
      %113 = tpu.matmul %111, %112, %cst_57 {dimension_numbers = #tpu.dot_dimension_numbers<[1], [0], [0], [1], [0, 0, 1, 1], [], []>} : vector<32x64xbf16>, vector<64x256xbf16>, vector<32x256xf32> -> vector<32x256xf32>
      %c0_58 = arith.constant 0 : index
      %c0_59 = arith.constant 0 : index
      %114 = vector.load %arg17[%c0_58, %c0_59] : memref<1x256xf32, #tpu.memory_space<vmem>>, vector<1x256xf32>
      %115 = vector.broadcast %114 : vector<1x256xf32> to vector<32x256xf32>
      %116 = arith.addf %113, %115 : vector<32x256xf32>
      %cst_60 = arith.constant 5.000000e-01 : f32
      %117 = vector.broadcast %cst_60 : f32 to vector<32x256xf32>
      %118 = arith.mulf %117, %116 : vector<32x256xf32>
      %cst_61 = arith.constant 0.707106769 : f32
      %119 = vector.broadcast %cst_61 : f32 to vector<32x256xf32>
      %120 = arith.mulf %116, %119 : vector<32x256xf32>
      %cst_62 = arith.constant 0.000000e+00 : f32
      %121 = vector.broadcast %cst_62 : f32 to vector<32x256xf32>
      %122 = arith.cmpf oge, %120, %121 : vector<32x256xf32>
      %cst_63 = arith.constant 1.000000e+00 : f32
      %cst_64 = arith.constant -1.000000e+00 : f32
      %123 = vector.broadcast %cst_63 : f32 to vector<32x256xf32>
      %124 = vector.broadcast %cst_64 : f32 to vector<32x256xf32>
      %125 = arith.select %122, %123, %124 : vector<32x256xi1>, vector<32x256xf32>
      %126 = math.absf %120 : vector<32x256xf32>
      %cst_65 = arith.constant 0.327591091 : f32
      %127 = vector.broadcast %cst_65 : f32 to vector<32x256xf32>
      %128 = arith.mulf %127, %126 : vector<32x256xf32>
      %cst_66 = arith.constant 1.000000e+00 : f32
      %129 = vector.broadcast %cst_66 : f32 to vector<32x256xf32>
      %130 = arith.addf %129, %128 : vector<32x256xf32>
      %cst_67 = arith.constant 1.000000e+00 : f32
      %131 = vector.broadcast %cst_67 : f32 to vector<32x256xf32>
      %132 = arith.divf %131, %130 : vector<32x256xf32>
      %cst_68 = arith.constant 1.06140542 : f32
      %133 = vector.broadcast %cst_68 : f32 to vector<32x256xf32>
      %134 = arith.mulf %133, %132 : vector<32x256xf32>
      %cst_69 = arith.constant -1.45315206 : f32
      %135 = vector.broadcast %cst_69 : f32 to vector<32x256xf32>
      %136 = arith.addf %134, %135 : vector<32x256xf32>
      %137 = arith.mulf %136, %132 : vector<32x256xf32>
      %cst_70 = arith.constant 1.42141378 : f32
      %138 = vector.broadcast %cst_70 : f32 to vector<32x256xf32>
      %139 = arith.addf %137, %138 : vector<32x256xf32>
      %140 = arith.mulf %139, %132 : vector<32x256xf32>
      %cst_71 = arith.constant -0.284496725 : f32
      %141 = vector.broadcast %cst_71 : f32 to vector<32x256xf32>
      %142 = arith.addf %140, %141 : vector<32x256xf32>
      %143 = arith.mulf %142, %132 : vector<32x256xf32>
      %cst_72 = arith.constant 0.254829586 : f32
      %144 = vector.broadcast %cst_72 : f32 to vector<32x256xf32>
      %145 = arith.addf %143, %144 : vector<32x256xf32>
      %146 = arith.mulf %145, %132 : vector<32x256xf32>
      %cst_73 = arith.constant 0.000000e+00 : f32
      %147 = vector.broadcast %cst_73 : f32 to vector<32x256xf32>
      %148 = arith.subf %147, %126 : vector<32x256xf32>
      %149 = arith.mulf %148, %126 : vector<32x256xf32>
      %150 = math.exp %149 : vector<32x256xf32>
      %151 = arith.mulf %146, %150 : vector<32x256xf32>
      %cst_74 = arith.constant 1.000000e+00 : f32
      %152 = vector.broadcast %cst_74 : f32 to vector<32x256xf32>
      %153 = arith.subf %152, %151 : vector<32x256xf32>
      %154 = arith.mulf %125, %153 : vector<32x256xf32>
      %cst_75 = arith.constant 1.000000e+00 : f32
      %155 = vector.broadcast %cst_75 : f32 to vector<32x256xf32>
      %156 = arith.addf %155, %154 : vector<32x256xf32>
      %157 = arith.mulf %118, %156 : vector<32x256xf32>
      %158 = arith.truncf %157 : vector<32x256xf32> to vector<32x256xbf16>
      %c0_76 = arith.constant 0 : index
      %c0_77 = arith.constant 0 : index
      %159 = vector.load %arg18[%c0_76, %c0_77] : memref<256x64xbf16, #tpu.memory_space<vmem>>, vector<256x64xbf16>
      %cst_78 = arith.constant dense<0.000000e+00> : vector<32x64xf32>
      %160 = tpu.matmul %158, %159, %cst_78 {dimension_numbers = #tpu.dot_dimension_numbers<[1], [0], [0], [1], [0, 0, 1, 1], [], []>} : vector<32x256xbf16>, vector<256x64xbf16>, vector<32x64xf32> -> vector<32x64xf32>
      %c0_79 = arith.constant 0 : index
      %c0_80 = arith.constant 0 : index
      %161 = vector.load %arg19[%c0_79, %c0_80] : memref<1x64xf32, #tpu.memory_space<vmem>>, vector<1x64xf32>
      %162 = vector.broadcast %161 : vector<1x64xf32> to vector<32x64xf32>
      %163 = arith.addf %160, %162 : vector<32x64xf32>
      %164 = arith.addf %163, %110 : vector<32x64xf32>
      %c0_81 = arith.constant 0 : index
      %c0_82 = arith.constant 0 : index
      %165 = vector.load %arg14[%c0_81, %c0_82] : memref<1x64xf32, #tpu.memory_space<vmem>>, vector<1x64xf32>
      %c0_83 = arith.constant 0 : index
      %c0_84 = arith.constant 0 : index
      %166 = vector.load %arg15[%c0_83, %c0_84] : memref<1x64xf32, #tpu.memory_space<vmem>>, vector<1x64xf32>
      %167 = vector.shape_cast %164 : vector<32x64xf32> to vector<1x32x64xf32>
      %cst_85 = arith.constant dense<0.000000e+00> : vector<1xf32>
      %168 = vector.multi_reduction <add>, %167, %cst_85 [1, 2] : vector<1x32x64xf32> to vector<1xf32>
      %169 = vector.shape_cast %168 : vector<1xf32> to vector<1x1x1xf32>
      %170 = vector.extract %169[0, 0, 0] : f32 from vector<1x1x1xf32>
      %171 = vector.broadcast %170 : f32 to vector<1x1xf32>
      %cst_86 = arith.constant 2.048000e+03 : f32
      %172 = vector.broadcast %cst_86 : f32 to vector<1x1xf32>
      %173 = arith.divf %171, %172 : vector<1x1xf32>
      %174 = vector.broadcast %173 : vector<1x1xf32> to vector<32x64xf32>
      %175 = arith.subf %164, %174 : vector<32x64xf32>
      %176 = arith.mulf %175, %175 : vector<32x64xf32>
      %177 = vector.shape_cast %176 : vector<32x64xf32> to vector<1x32x64xf32>
      %cst_87 = arith.constant dense<0.000000e+00> : vector<1xf32>
      %178 = vector.multi_reduction <add>, %177, %cst_87 [1, 2] : vector<1x32x64xf32> to vector<1xf32>
      %179 = vector.shape_cast %178 : vector<1xf32> to vector<1x1x1xf32>
      %180 = vector.extract %179[0, 0, 0] : f32 from vector<1x1x1xf32>
      %181 = vector.broadcast %180 : f32 to vector<1x1xf32>
      %cst_88 = arith.constant 2.048000e+03 : f32
      %182 = vector.broadcast %cst_88 : f32 to vector<1x1xf32>
      %183 = arith.divf %181, %182 : vector<1x1xf32>
      %184 = math.sqrt %183 : vector<1x1xf32>
      %cst_89 = arith.constant 9.99999974E-6 : f32
      %185 = vector.broadcast %cst_89 : f32 to vector<1x1xf32>
      %186 = arith.addf %184, %185 : vector<1x1xf32>
      %cst_90 = arith.constant 1.000000e+00 : f32
      %187 = vector.broadcast %cst_90 : f32 to vector<1x1xf32>
      %188 = arith.divf %187, %186 : vector<1x1xf32>
      %189 = vector.broadcast %188 : vector<1x1xf32> to vector<32x64xf32>
      %190 = arith.mulf %175, %189 : vector<32x64xf32>
      %191 = vector.broadcast %165 : vector<1x64xf32> to vector<32x64xf32>
      %192 = arith.mulf %190, %191 : vector<32x64xf32>
      %193 = vector.broadcast %166 : vector<1x64xf32> to vector<32x64xf32>
      %194 = arith.addf %192, %193 : vector<32x64xf32>
      %195 = vector.shape_cast %194 : vector<32x64xf32> to vector<2x16x64xf32>
      %c0_91 = arith.constant 0 : index
      %c0_92 = arith.constant 0 : index
      %c0_93 = arith.constant 0 : index
      %196 = vector.load %arg20[%c0_91, %c0_92, %c0_93] : memref<2x16x64xf32, #tpu.memory_space<vmem>>, vector<2x16x64xf32>
      tpu.vector_store %arg20[%c0_91, %c0_92, %c0_93], %195 {strides = array<i32>} : memref<2x16x64xf32, #tpu.memory_space<vmem>>, vector<2x16x64xf32>,
    } else {
    }
    return
  }
  func.func @transform_0(%arg0: i32) -> (i32, i32, i32) {
    %c0_i32 = arith.constant 0 : i32
    %c0_i32_0 = arith.constant 0 : i32
    %c0_i32_1 = arith.constant 0 : i32
    return %arg0, %c0_i32, %c0_i32_0 : i32, i32, i32
  }
  func.func @transform_1(%arg0: i32) -> (i32, i32, i32) {
    %c0_i32 = arith.constant 0 : i32
    %c0_i32_0 = arith.constant 0 : i32
    %c0_i32_1 = arith.constant 0 : i32
    return %arg0, %c0_i32, %c0_i32_0 : i32, i32, i32
  }
  func.func @transform_2(%arg0: i32) -> (i32, i32, i32) {
    %c0_i32 = arith.constant 0 : i32
    %c0_i32_0 = arith.constant 0 : i32
    %c0_i32_1 = arith.constant 0 : i32
    return %arg0, %c0_i32, %c0_i32_0 : i32, i32, i32
  }
  func.func @transform_3(%arg0: i32) -> (i32, i32) {
    %c0_i32 = arith.constant 0 : i32
    %c0_i32_0 = arith.constant 0 : i32
    %c0_i32_1 = arith.constant 0 : i32
    return %c0_i32, %c0_i32_0 : i32, i32
  }
  func.func @transform_4(%arg0: i32) -> (i32, i32) {
    %c0_i32 = arith.constant 0 : i32
    %c0_i32_0 = arith.constant 0 : i32
    %c0_i32_1 = arith.constant 0 : i32
    return %c0_i32, %c0_i32_0 : i32, i32
  }
  func.func @transform_5(%arg0: i32) -> (i32, i32) {
    %c0_i32 = arith.constant 0 : i32
    %c0_i32_0 = arith.constant 0 : i32
    %c0_i32_1 = arith.constant 0 : i32
    return %c0_i32, %c0_i32_0 : i32, i32
  }
  func.func @transform_6(%arg0: i32) -> (i32, i32) {
    %c0_i32 = arith.constant 0 : i32
    %c0_i32_0 = arith.constant 0 : i32
    %c0_i32_1 = arith.constant 0 : i32
    return %c0_i32, %c0_i32_0 : i32, i32
  }
  func.func @transform_7(%arg0: i32) -> (i32, i32) {
    %c0_i32 = arith.constant 0 : i32
    %c0_i32_0 = arith.constant 0 : i32
    %c0_i32_1 = arith.constant 0 : i32
    return %c0_i32, %c0_i32_0 : i32, i32
  }
  func.func @transform_8(%arg0: i32) -> (i32, i32) {
    %c0_i32 = arith.constant 0 : i32
    %c0_i32_0 = arith.constant 0 : i32
    %c0_i32_1 = arith.constant 0 : i32
    return %c0_i32, %c0_i32_0 : i32, i32
  }
  func.func @transform_9(%arg0: i32) -> (i32, i32) {
    %c0_i32 = arith.constant 0 : i32
    %c0_i32_0 = arith.constant 0 : i32
    %c0_i32_1 = arith.constant 0 : i32
    return %c0_i32, %c0_i32_0 : i32, i32
  }
  func.func @transform_10(%arg0: i32) -> (i32, i32) {
    %c0_i32 = arith.constant 0 : i32
    %c0_i32_0 = arith.constant 0 : i32
    %c0_i32_1 = arith.constant 0 : i32
    return %c0_i32, %c0_i32_0 : i32, i32
  }
  func.func @transform_11(%arg0: i32) -> (i32, i32) {
    %c0_i32 = arith.constant 0 : i32
    %c0_i32_0 = arith.constant 0 : i32
    %c0_i32_1 = arith.constant 0 : i32
    return %c0_i32, %c0_i32_0 : i32, i32
  }
  func.func @transform_12(%arg0: i32) -> (i32, i32) {
    %c0_i32 = arith.constant 0 : i32
    %c0_i32_0 = arith.constant 0 : i32
    %c0_i32_1 = arith.constant 0 : i32
    return %c0_i32, %c0_i32_0 : i32, i32
  }
  func.func @transform_13(%arg0: i32) -> (i32, i32) {
    %c0_i32 = arith.constant 0 : i32
    %c0_i32_0 = arith.constant 0 : i32
    %c0_i32_1 = arith.constant 0 : i32
    return %c0_i32, %c0_i32_0 : i32, i32
  }
  func.func @transform_14(%arg0: i32) -> (i32, i32) {
    %c0_i32 = arith.constant 0 : i32
    %c0_i32_0 = arith.constant 0 : i32
    %c0_i32_1 = arith.constant 0 : i32
    return %c0_i32, %c0_i32_0 : i32, i32
  }
  func.func @transform_15(%arg0: i32) -> (i32, i32) {
    %c0_i32 = arith.constant 0 : i32
    %c0_i32_0 = arith.constant 0 : i32
    %c0_i32_1 = arith.constant 0 : i32
    return %c0_i32, %c0_i32_0 : i32, i32
  }
  func.func @transform_16(%arg0: i32) -> (i32, i32) {
    %c0_i32 = arith.constant 0 : i32
    %c0_i32_0 = arith.constant 0 : i32
    %c0_i32_1 = arith.constant 0 : i32
    return %c0_i32, %c0_i32_0 : i32, i32
  }
  func.func @transform_17(%arg0: i32) -> (i32, i32) {
    %c0_i32 = arith.constant 0 : i32
    %c0_i32_0 = arith.constant 0 : i32
    %c0_i32_1 = arith.constant 0 : i32
    return %c0_i32, %c0_i32_0 : i32, i32
  }
  func.func @transform_18(%arg0: i32) -> (i32, i32) {
    %c0_i32 = arith.constant 0 : i32
    %c0_i32_0 = arith.constant 0 : i32
    %c0_i32_1 = arith.constant 0 : i32
    return %c0_i32, %c0_i32_0 : i32, i32
  }
  func.func @transform_19(%arg0: i32) -> (i32, i32, i32) {
    %c0_i32 = arith.constant 0 : i32
    %c0_i32_0 = arith.constant 0 : i32
    %c0_i32_1 = arith.constant 0 : i32
    %c0_i32_2 = arith.constant 0 : i32
    return %c0_i32, %c0_i32_0, %c0_i32_1 : i32, i32, i32
  }
}

</mosaic_0001>

<bundles_post_ra>
// kernel: tpu_custom_call.1
= control target key start
LH: loop header
LB: loop body
LE: loop exit
PB: predicated region body
PF: predicated region fallthrough
CT: control target
= control target key end

     0   :  { %s3705_s0 = inlined_call_operand.vmem [shape: f32[2,16,64], index: 0, kind: input, shape index: {}]   ;;  %s3706_s1 = inlined_call_operand.vmem [shape: bf16[2,16,16], index: 1, kind: input, shape index: {}]   ;;  %s3707_s2 = inlined_call_operand.vmem [shape: f32[2,16,1], index: 2, kind: input, shape index: {}]   ;;  %s3708_s3 = inlined_call_operand.vmem [shape: bf16[64,64], index: 3, kind: input, shape index: {}]   ;;  %s3709_s4 = inlined_call_operand.vmem [shape: bf16[64,64], index: 4, kind: input, shape index: {}]   ;;  %s3710_s5 = inlined_call_operand.vmem [shape: bf16[64,64], index: 5, kind: input, shape index: {}]   ;;  %s3711_s6 = inlined_call_operand.vmem [shape: bf16[64,64], index: 6, kind: input, shape index: {}]   ;;  %s3712_s7 = inlined_call_operand.vmem [shape: bf16[16,128], index: 7, kind: input, shape index: {}]   ;;  %s3713_s8 = inlined_call_operand.vmem [shape: bf16[128,16], index: 8, kind: input, shape index: {}]   ;;  %s3714_s9 = inlined_call_operand.vmem [shape: bf16[64,128], index: 9, kind: input, shape index: {}]   ;;  %s3715_s10 = inlined_call_operand.vmem [shape: bf16[128,64], index: 10, kind: input, shape index: {}]   ;;  %s3716_s11 = inlined_call_operand.vmem [shape: f32[1,64], index: 11, kind: input, shape index: {}]   ;;  %s3717_s12 = inlined_call_operand.vmem [shape: f32[1,64], index: 12, kind: input, shape index: {}]   ;;  %s3718_s13 = inlined_call_operand.vmem [shape: f32[1,64], index: 13, kind: input, shape index: {}]   ;;  %s3719_s14 = inlined_call_operand.vmem [shape: f32[1,64], index: 14, kind: input, shape index: {}]   ;;  %s3720_s15 = inlined_call_operand.vmem [shape: bf16[64,256], index: 15, kind: input, shape index: {}]   ;;  %s3721_s16 = inlined_call_operand.vmem [shape: f32[1,256], index: 16, kind: input, shape index: {}]   ;;  %s3722_s17 = inlined_call_operand.vmem [shape: bf16[256,64], index: 17, kind: input, shape index: {}]   ;;  %s3723_s18 = inlined_call_operand.vmem [shape: f32[1,64], index: 18, kind: input, shape index: {}]   ;;  %s3724_s19 = inlined_call_operand.hbm [shape: f32[2,16,64], index: 19, kind: output, shape index: {}]  }
   0x1   :  { %3729 = sst [smem:[#allocation5_spill]] %s3705_s0 }
   0x2   :  { %3730 = sst [smem:[#allocation6_spill]] %s3706_s1 }
   0x3   :  { %3731 = sst [smem:[#allocation7_spill]] %s3707_s2 }
   0x4   :  { %3732 = sst [smem:[#allocation8_spill]] %s3708_s3 }
   0x5   :  { %s3733_s20 = sld [smem:[#allocation7_spill]]  ;;  %v2845_v2 = vmov 0   ;;  %s3734_s26 = sld [smem:[#allocation8_spill]]  ;;  %v2702_v6 = vld [vmem:[%s3710_s5] sm:$0xff]   ;;  %v2704_v8 = vld [vmem:[%s3710_s5 + $0x8] sm:$0xff]   ;;  %v2706_v10 = vld [vmem:[%s3710_s5 + $0x10] sm:$0xff]  }
   0x6   :  { %2700 = vset.pattern.permute.xlu1 %v2845_v2  ;;  %2699 = vset.pattern.permute.xlu0 %v2845_v2  ;;  %v2708_v12 = vld [vmem:[%s3710_s5 + $0x18] sm:$0xff]   ;;  %v2709_v13 = vld [vmem:[%s3709_s4] sm:$0xff]  }
   0x7   :  { %2513 = vmatprep.subr.bf16.mxu0 %v2702_v6 }
   0x8   :  { %2514 = vmatpush3.bf16.msra.mxu0 %v2702_v6 }
   0x9   :  { %2515 = vmatprep.subr.bf16.mxu0 %v2704_v8 }
   0xb   :  { %v70_v0 = vld [vmem:[%s3733_s20 + $0x10] sm:$0xff]  ;;  %v68_v1 = vld [vmem:[%s3733_s20] sm:$0xff]  ;;  %v71_v3 = vld [vmem:[%s3733_s20 + $0x18] sm:$0xff] }
   0xc   :  { %v69_v4 = vld [vmem:[%s3733_s20 + $0x8] sm:$0xff]  ;;  %84 = vperm.xlu1 %2700, %v70_v0   ;;  %74 = vperm.xlu0 %2699, %v68_v1   ;;  %v2701_v5 = vld [vmem:[%s3734_s26] sm:$0xff]   ;;  %v2705_v9 = vld [vmem:[%s3734_s26 + $0x10] sm:$0xff]  }
   0xd   :  { %2489 = vmatprep.subr.bf16.mxu1 %v2701_v5  ;;  %v2703_v7 = vld [vmem:[%s3734_s26 + $0x8] sm:$0xff]   ;;  %v2707_v11 = vld [vmem:[%s3734_s26 + $0x18] sm:$0xff]   ;;  %2516 = vmatpush3.bf16.msra.mxu0 %v2704_v8 }
   0xe   :  { %2490 = vmatpush3.bf16.msra.mxu1 %v2701_v5  ;;  %2517 = vmatprep.subr.bf16.mxu0 %v2706_v10 }
   0xf   :  { %2491 = vmatprep.subr.bf16.mxu1 %v2703_v7 }
  0x10   :  { %89 = vperm.xlu1 %2700, %v71_v3   ;;  %79 = vperm.xlu0 %2699, %v69_v4  }
  0x11   :  { %2518 = vmatpush3.bf16.msra.mxu0 %v2706_v10 }
  0x12   :  { %2492 = vmatpush3.bf16.msra.mxu1 %v2703_v7  ;;  %2519 = vmatprep.subr.bf16.mxu0 %v2708_v12 }
  0x13   :  { %2493 = vmatprep.subr.bf16.mxu1 %v2705_v9 }
  0x15   :  { %2520 = vmatpush3.bf16.msra.mxu0 %v2708_v12 }
  0x16   :  { %2494 = vmatpush3.bf16.msra.mxu1 %v2705_v9 }
  0x17   :  { %2495 = vmatprep.subr.bf16.mxu1 %v2707_v11 }
  0x1a   :  { %2496 = vmatpush3.bf16.msra.mxu1 %v2707_v11 }
  0x1b   :  { %2501 = vmatprep.subr.bf16.mxu1 %v2709_v13 }
  0x1c   :  { %24 = vsyncpa [#allocation3], 0  ;;  %s3735_s0 = sld [smem:[#allocation5_spill]]  ;;  %vm130_vm0 = vcmask 523264   ;;  %v2710_v28 = vld [vmem:[%s3709_s4 + $0x8] sm:$0xff]   ;;  %v2711_v29 = vld [vmem:[%s3709_s4 + $0x10] sm:$0xff]  }
  0x1d   :  { %v2712_v30 = vld [vmem:[%s3709_s4 + $0x18] sm:$0xff]   ;;  %v2713_v47 = vld [vmem:[%s3712_s7] sm:$0xff]   ;;  %vm428_vm1 = vcmask 130048   ;;  %v2846_v9 = vmov 0.0   ;;  %vm2847_vm2 = vmmov 0   ;;  %v2359_v10 = vld [vmem:[%s3714_s9 + $0x8] sm:$0xff]  }
  0x1e   :  { %2543 = vmatprep.subr.bf16.mxu0 %v2846_v9  ;;  %v2312_v11 = vld [vmem:[%s3714_s9] sm:$0xff]   ;;  %v2317_v12 = vunpack.c.l.bf16 %v2359_v10  ;;  %s3736_s24 = sld [smem:[#allocation6_spill]]  ;;  %s2849_s30 = smov 16  }
  0x1f   :  { %s2850_s23 = smov 32   ;;  %s2851_s22 = smov 64  }
  0x22   :  { %v2999_v16 = vld [vmem:[%s3735_s0 + $0x10] sm:$0xff]  ;;  %v3004_v17 = vld [vmem:[%s3735_s0] sm:$0xff]  ;;  %v3009_v18 = vld [vmem:[%s3735_s0 + $0x18] sm:$0xff] }
  0x23   :  { %v3014_v19 = vld [vmem:[%s3735_s0 + $0x8] sm:$0xff] }
  0x8b   :  { %v85_v14 = vpop.permute.xlu1 %84  ;;  %v75_v15 = vpop.permute.xlu0 %74 }
  0x8c   :  { %v94_v22 = vmul.f32 %v85_v14, %v2999_v16  ;;  %v92_v23 = vmul.f32 %v75_v15, %v3004_v17  ;;  %v2313_v15 = vunpack.c.l.bf16 %v2312_v11 }
  0x8f   :  { %v90_v20 = vpop.permute.xlu1 %89  ;;  %v80_v21 = vpop.permute.xlu0 %79 }
  0x90   :  { %v95_v24 = vmul.f32 %v90_v20, %v3009_v18  ;;  %v93_v25 = vmul.f32 %v80_v21, %v3014_v19  ;;  %v2314_v20 = vunpack.c.h.bf16 %v2312_v11  ;;  %v2717_v11 = vld [vmem:[%s3736_s24 + $0x8] sm:$0xff]  }
  0x92   :  { %v97_v26 = vpack.c.bf16 %v95_v24, %v94_v22  ;;  %v96_v27 = vpack.c.bf16 %v93_v25, %v92_v23 }
  0x94   :  { %2497 = vmatprep.mubr.msk.bf16.mxu1 %vm130_vm0, %v96_v27  ;;  %2521 = vmatprep.mubr.msk.bf16.mxu0 %vm130_vm0, %v96_v27 }
  0x95   :  { %2498 = vmatmul.mubr.msk.bf16.vlgmr.msra.gmra.mrb[0].mxu1 %vm130_vm0, %v97_v26  ;;  %2522 = vmatmul.mubr.msk.bf16.vlgmr.msra.gmra.mrb[0].mxu0 %vm130_vm0, %v97_v26 }
  0x96   :  { %2502 = vmatpush3.bf16.msra.mxu1 %v2709_v13  ;;  %2509 = vmatprep.mubr.msk.bf16.mxu1 %vm130_vm0, %v96_v27  ;;  %v2318_v13 = vunpack.c.h.bf16 %v2359_v10 }
  0x97   :  { %2503 = vmatprep.subr.bf16.mxu1 %v2710_v28  ;;  %2551 = vmatprep.mubr.msk.bf16.mxu0 %vm2847_vm2, %v2846_v9 }
  0x9a   :  { %2504 = vmatpush3.bf16.msra.mxu1 %v2710_v28 }
  0x9b   :  { %2505 = vmatprep.subr.bf16.mxu1 %v2711_v29 }
  0x9e   :  { %2506 = vmatpush3.bf16.msra.mxu1 %v2711_v29 }
  0x9f   :  { %2507 = vmatprep.subr.bf16.mxu1 %v2712_v30 }
  0xa2   :  { %2508 = vmatpush3.bf16.msra.mxu1 %v2712_v30  ;;  %v2361_v30 = vld [vmem:[%s3714_s9 + $0x18] sm:$0xff]  }
  0xa3   :  { %2525 = vmatprep.subr.bf16.mxu1 %v2713_v47 }
  0xa5   :  { %2510 = vmatmul.mubr.msk.bf16.vlgmr.msra.gmra.mrb[4].mxu1 %vm130_vm0, %v97_v26 }
  0xa6   :  { %2526 = vmatpush3.bf16.msra.mxu1 %v2713_v47 }
  0xa7   :  { %2555 = vmatprep.subr.bf16.mxu1 %v2846_v9 }
 0x168   :  { %v3035_v31 = vpop.f32.mrb[0].mxu1  ;;  %v2523_v32 = vpop.f32.mrb[0].mxu0 }
 0x169   :  { %v3037_v33 = vpop.f32.mrb[1].mxu1  ;;  %v333_v34 = vpop.f32.mrb[1].mxu0 }
 0x16a   :  { %v3039_v35 = vpop.f32.mrb[2].mxu1  ;;  %v2524_v36 = vpop.f32.mrb[2].mxu0 }
 0x16b   :  { %v591_v37 = vpack.c.bf16 %v3039_v35, %v3035_v31  ;;  %v3043_v38 = vpack.c.bf16 %v2524_v36, %v2523_v32  ;;  %v3045_v39 = vpop.f32.mrb[3].mxu1  ;;  %v336_v40 = vpop.f32.mrb[3].mxu0  ;;  %v2360_v32 = vld [vmem:[%s3714_s9 + $0x10] sm:$0xff]   ;;  %v2326_v36 = vunpack.c.h.bf16 %v2361_v30  ;;  %v2724_v35 = vld [vmem:[%s3715_s10 + $0x38] sm:$0xff]  }
 0x16c   :  { %v590_v41 = vpack.c.bf16 %v3045_v39, %v3037_v33  ;;  %v3049_v42 = vpack.c.bf16 %v336_v40, %v333_v34  ;;  %v2325_v34 = vunpack.c.l.bf16 %v2361_v30  ;;  %v2723_v31 = vld [vmem:[%s3715_s10 + $0x30] sm:$0xff]  }
 0x178   :  { %v2511_v43 = vpop.f32.mrb[4].mxu1 }
 0x179   :  { %380 = vxpose.xlu1.b32.start [1/2] (short) (narrow) %v2511_v43, 64  ;;  %v252_v44 = vpop.f32.mrb[5].mxu1  ;;  %v2321_v43 = vunpack.c.l.bf16 %v2360_v32 }
 0x17a   :  { %348 = vxpose.xlu0.b32.start [1/2] (short) (narrow) %v252_v44, 64  ;;  %v2512_v45 = vpop.f32.mrb[6].mxu1  ;;  %v2322_v44 = vunpack.c.h.bf16 %v2360_v32 }
 0x17b   :  { %v255_v46 = vpop.f32.mrb[7].mxu1 }
 0x17d   :  { %381 = vxpose.xlu1.b32.end [2/2] (short) (narrow) %v2512_v45, 64 }
 0x17e   :  { %349 = vxpose.xlu0.b32.end [2/2] (short) (narrow) %v255_v46, 64 }
 0x1f9   :  { %v396_v49 = vpop.trf.xlu1 }
 0x1fa   :  { %v364_v48 = vpop.trf.xlu0 }
 0x1fd   :  { %v397_v52 = vpop.trf.xlu1 }
 0x1fe   :  { %v365_v50 = vpop.trf.xlu0  ;;  %v416_v1 = vpack.c.bf16 %v397_v52, %v396_v49 }
 0x1ff   :  { %v412_v51 = vpack.c.bf16 %v365_v50, %v364_v48 }
 0x201   :  { %2527 = vmatprep.mubr.msk.bf16.mxu1 %vm428_vm1, %v412_v51  ;;  %v398_v55 = vpop.trf.xlu1 }
 0x202   :  { %v366_v53 = vpop.trf.xlu0 }
 0x205   :  { %v399_v58 = vpop.trf.xlu1 }
 0x206   :  { %v367_v54 = vpop.trf.xlu0  ;;  %v417_v5 = vpack.c.bf16 %v399_v58, %v398_v55 }
 0x207   :  { %v413_v56 = vpack.c.bf16 %v367_v54, %v366_v53 }
 0x209   :  { %2528 = vmatmul.mubr.msk.bf16.vlgmr.msra.gmra.mrb[8].mxu1 %vm428_vm1, %v413_v56  ;;  %v400_v62 = vpop.trf.xlu1  ;;  %v2714_v56 = vld [vmem:[%s3712_s7] sm:$0xff]  }
 0x20a   :  { %v368_v57 = vpop.trf.xlu0 }
 0x20d   :  { %v401_v3 = vpop.trf.xlu1 }
 0x20e   :  { %v369_v59 = vpop.trf.xlu0  ;;  %v418_v6 = vpack.c.bf16 %v401_v3, %v400_v62  ;;  %v2716_v3 = vld [vmem:[%s3715_s10] sm:$0xff]  }
 0x20f   :  { %v414_v60 = vpack.c.bf16 %v369_v59, %v368_v57 }
 0x211   :  { %2531 = vmatprep.mubr.msk.bf16.mxu1 %vm428_vm1, %v414_v60  ;;  %v402_v4 = vpop.trf.xlu1 }
 0x212   :  { %v370_v61 = vpop.trf.xlu0 }
 0x215   :  { %v403_v7 = vpop.trf.xlu1 }
 0x216   :  { %v371_v63 = vpop.trf.xlu0  ;;  %v419_v8 = vpack.c.bf16 %v403_v7, %v402_v4 }
 0x217   :  { %v415_v0 = vpack.c.bf16 %v371_v63, %v370_v61 }
 0x219   :  { %2532 = vmatmul.mubr.msk.bf16.gmra.mrb[12].mxu1 %vm428_vm1, %v415_v0  ;;  %v2715_v0 = vld [vmem:[%s3736_s24] sm:$0xff]   ;;  %s2848_s24 = smov 8  }
 0x21a   :  { %2535 = vmatprep.mubr.msk.bf16.mxu1 %vm428_vm1, %v416_v1 }
 0x221   :  { %2536 = vmatmul.mubr.msk.bf16.gmra.mrb[16].mxu1 %vm428_vm1, %v417_v5 }
 0x222   :  { %2539 = vmatprep.mubr.msk.bf16.mxu1 %vm428_vm1, %v418_v6 }
 0x229   :  { %2540 = vmatmul.mubr.msk.bf16.gmra.mrb[20].mxu1 %vm428_vm1, %v419_v8 }
 0x22a   :  { %2563 = vmatprep.mubr.msk.bf16.mxu1 %vm2847_vm2, %v2846_v9 }
 0x2dc   :  { %v2529_v14 = vpop.f32.mrb[8].mxu1 }
 0x2dd   :  { %v487_v21 = vpop.f32.mrb[9].mxu1  ;;  %v568_v23 = vmul.f32 %v2529_v14, %v2317_v12  ;;  %v2719_v14 = vld [vmem:[%s3715_s10 + $0x10] sm:$0xff]  }
 0x2de   :  { %v2530_v22 = vpop.f32.mrb[10].mxu1  ;;  %v566_v26 = vmul.f32 %v2313_v15, %v487_v21  ;;  %v2722_v21 = vld [vmem:[%s3715_s10 + $0x28] sm:$0xff]  }
 0x2df   :  { %v569_v24 = vmul.f32 %v2530_v22, %v2318_v13  ;;  %v490_v25 = vpop.f32.mrb[11].mxu1 }
 0x2e0   :  { %v567_v27 = vmul.f32 %v2314_v20, %v490_v25 }
 0x2e1   :  { %v583_v28 = vpack.c.bf16 %v569_v24, %v568_v23 }
 0x2e2   :  { %v582_v29 = vpack.c.bf16 %v567_v27, %v566_v26 }
 0x2e4   :  { %2544 = vmatpush3.bf16.msra.mxu0 %v582_v29 }
 0x2e5   :  { %2545 = vmatprep.subr.bf16.mxu0 %v2846_v9 }
 0x2e8   :  { %2546 = vmatpush3.bf16.msra.mxu0 %v583_v28 }
 0x2e9   :  { %2547 = vmatprep.subr.bf16.mxu0 %v2846_v9 }
 0x2ec   :  { %v2533_v40 = vpop.f32.mrb[12].mxu1 }
 0x2ed   :  { %v503_v45 = vpop.f32.mrb[13].mxu1  ;;  %v572_v47 = vmul.f32 %v2533_v40, %v2325_v34 }
 0x2ee   :  { %v2534_v46 = vpop.f32.mrb[14].mxu1  ;;  %v570_v50 = vmul.f32 %v2321_v43, %v503_v45 }
 0x2ef   :  { %v573_v48 = vmul.f32 %v2534_v46, %v2326_v36  ;;  %v506_v49 = vpop.f32.mrb[15].mxu1 }
 0x2f0   :  { %v571_v51 = vmul.f32 %v2322_v44, %v506_v49 }
 0x2f1   :  { %v585_v52 = vpack.c.bf16 %v573_v48, %v572_v47 }
 0x2f2   :  { %v584_v53 = vpack.c.bf16 %v571_v51, %v570_v50 }
 0x2f4   :  { %v2537_v54 = vpop.f32.mrb[16].mxu1  ;;  %2548 = vmatpush3.bf16.msra.mxu0 %v584_v53  ;;  %v3157_v53 = vld [vmem:[%s3713_s8 + $0x8] sm:$0xff]  }
 0x2f5   :  { %v519_v55 = vpop.f32.mrb[17].mxu1  ;;  %2549 = vmatprep.subr.bf16.mxu0 %v2846_v9  ;;  %v576_v58 = vmul.f32 %v2537_v54, %v2317_v12  ;;  %v2718_v12 = vld [vmem:[%s3715_s10 + $0x8] sm:$0xff]   ;;  %v3166_v54 = vld [vmem:[%s3713_s8 + $0x10] sm:$0xff]  }
 0x2f6   :  { %v2538_v57 = vpop.f32.mrb[18].mxu1  ;;  %v574_v61 = vmul.f32 %v2313_v15, %v519_v55  ;;  %v2720_v15 = vld [vmem:[%s3715_s10 + $0x18] sm:$0xff]  }
 0x2f7   :  { %v577_v59 = vmul.f32 %v2538_v57, %v2318_v13  ;;  %v522_v60 = vpop.f32.mrb[19].mxu1 }
 0x2f8   :  { %v575_v62 = vmul.f32 %v2314_v20, %v522_v60  ;;  %2550 = vmatpush3.bf16.msra.mxu0 %v585_v52  ;;  %v2721_v20 = vld [vmem:[%s3715_s10 + $0x20] sm:$0xff]  }
 0x2f9   :  { %v587_v63 = vpack.c.bf16 %v577_v59, %v576_v58  ;;  %2567 = vmatprep.subr.bf16.mxu0 %v2714_v56  ;;  %v3152_v52 = vld [vmem:[%s3713_s8] sm:$0xff]  }
 0x2fa   :  { %v586_v1 = vpack.c.bf16 %v575_v62, %v574_v61  ;;  %v3179_v58 = vld [vmem:[%s3713_s8 + $0x20] sm:$0xff]  }
 0x2fb   :  { %2552 = vmatmul.mubr.msk.bf16.vlgmr.msra.gmra.mrb[4].mxu0 %vm130_vm0, %v590_v41 }
 0x2fc   :  { %v2541_v4 = vpop.f32.mrb[20].mxu1  ;;  %2556 = vmatpush3.bf16.msra.mxu1 %v586_v1  ;;  %2568 = vmatpush3.bf16.msra.mxu0 %v2714_v56  ;;  %v3173_v56 = vld [vmem:[%s3713_s8 + $0x18] sm:$0xff]   ;;  %v3191_v1 = vld [vmem:[%s3713_s8 + $0x28] sm:$0xff]  }
 0x2fd   :  { %v535_v5 = vpop.f32.mrb[21].mxu1  ;;  %2557 = vmatprep.subr.bf16.mxu1 %v2846_v9  ;;  %2569 = vmatprep.mubr.msk.bf16.mxu0 %vm428_vm1, %v2715_v0  ;;  %v580_v7 = vmul.f32 %v2541_v4, %v2325_v34  ;;  %v3205_v4 = vld [vmem:[%s3713_s8 + $0x38] sm:$0xff]  }
 0x2fe   :  { %v2542_v6 = vpop.f32.mrb[22].mxu1  ;;  %2573 = vmatprep.subr.bf16.mxu0 %v2716_v3  ;;  %v578_v33 = vmul.f32 %v2321_v43, %v535_v5 }
 0x2ff   :  { %v581_v8 = vmul.f32 %v2542_v6, %v2326_v36  ;;  %v538_v10 = vpop.f32.mrb[23].mxu1 }
 0x300   :  { %v579_v39 = vmul.f32 %v2322_v44, %v538_v10  ;;  %2558 = vmatpush3.bf16.msra.mxu1 %v587_v63 }
 0x301   :  { %v589_v41 = vpack.c.bf16 %v581_v8, %v580_v7  ;;  %2559 = vmatprep.subr.bf16.mxu1 %v2846_v9 }
 0x302   :  { %v588_v13 = vpack.c.bf16 %v579_v39, %v578_v33 }
 0x303   :  { %2570 = vmatmul.mubr.msk.bf16.vlgmr.msra.gmra.mrb[8].mxu0 %vm428_vm1, %v2717_v11 }
 0x304   :  { %2574 = vmatpush3.bf16.msra.mxu0 %v2716_v3  ;;  %2560 = vmatpush3.bf16.msra.mxu1 %v588_v13  ;;  %v3196_v3 = vld [vmem:[%s3713_s8 + $0x30] sm:$0xff]  }
 0x305   :  { %2575 = vmatprep.subr.bf16.mxu0 %v2718_v12  ;;  %2561 = vmatprep.subr.bf16.mxu1 %v2846_v9 }
 0x308   :  { %2576 = vmatpush3.bf16.msra.mxu0 %v2718_v12  ;;  %2562 = vmatpush3.bf16.msra.mxu1 %v589_v41  ;;  %v3226_v41 = vld [vmem:[%s3715_s10 + $0x8] sm:$0xff]   ;;  %v3231_v12 = vld [vmem:[%s3715_s10] sm:$0xff]  }
 0x309   :  { %2593 = vmatprep.subr.bf16.mxu1 %v3049_v42  ;;  %2577 = vmatprep.subr.bf16.mxu0 %v2719_v14  ;;  %v2333_v13 = vunpack.c.l.bf16 %v3226_v41 }
 0x30b   :  { %2564 = vmatmul.mubr.msk.bf16.vlgmr.msra.gmra.mrb[24].mxu1 %vm130_vm0, %v591_v37 }
 0x30c   :  { %2578 = vmatpush3.bf16.msra.mxu0 %v2719_v14  ;;  %2594 = vmatpush3.bf16.msra.mxu1 %v3049_v42  ;;  %v2329_v14 = vunpack.c.l.bf16 %v3231_v12 }
 0x30d   :  { %2579 = vmatprep.subr.bf16.mxu0 %v2720_v15  ;;  %2629 = vmatprep.subr.bf16.mxu1 %v2846_v9 }
 0x30e   :  { %2595 = vmatprep.mubr.msk.bf16.mxu1 %vm428_vm1, %v3152_v52 }
 0x310   :  { %2580 = vmatpush3.bf16.msra.mxu0 %v2720_v15  ;;  %v2334_v15 = vunpack.c.h.bf16 %v3226_v41 }
 0x311   :  { %2581 = vmatprep.subr.bf16.mxu0 %v2721_v20 }
 0x313   :  { %2596 = vmatmul.mubr.msk.bf16.vlgmr.msra.gmra.mrb[28].mxu1 %vm428_vm1, %v3157_v53 }
 0x314   :  { %2582 = vmatpush3.bf16.msra.mxu0 %v2721_v20  ;;  %2599 = vmatprep.mubr.msk.bf16.mxu1 %vm428_vm1, %v3166_v54 }
 0x315   :  { %2583 = vmatprep.subr.bf16.mxu0 %v2722_v21 }
 0x318   :  { %2584 = vmatpush3.bf16.msra.mxu0 %v2722_v21  ;;  %v2330_v21 = vunpack.c.h.bf16 %v3231_v12 }
 0x319   :  { %2585 = vmatprep.subr.bf16.mxu0 %v2723_v31 }
 0x31b   :  { %2600 = vmatmul.mubr.msk.bf16.gmra.mrb[32].mxu1 %vm428_vm1, %v3173_v56 }
 0x31c   :  { %2586 = vmatpush3.bf16.msra.mxu0 %v2723_v31  ;;  %2603 = vmatprep.mubr.msk.bf16.mxu1 %vm428_vm1, %v3179_v58 }
 0x31d   :  { %2587 = vmatprep.subr.bf16.mxu0 %v2724_v35 }
 0x320   :  { %2588 = vmatpush3.bf16.msra.mxu0 %v2724_v35 }
 0x321   :  { %2611 = vmatprep.subr.bf16.mxu0 %v3043_v38 }
 0x323   :  { %2604 = vmatmul.mubr.msk.bf16.gmra.mrb[36].mxu1 %vm428_vm1, %v3191_v1 }
 0x324   :  { %2607 = vmatprep.mubr.msk.bf16.mxu1 %vm428_vm1, %v3196_v3 }
 0x32b   :  { %2608 = vmatmul.mubr.msk.bf16.gmra.mrb[40].mxu1 %vm428_vm1, %v3205_v4 }
 0x32c   :  { %2645 = vmatprep.mubr.msk.bf16.mxu1 %vm2847_vm2, %v2846_v9 }
 0x3ce   :  { %v629_v37 = vpop.f32.mrb[4].mxu0 }
 0x3cf   :  { %v2553_v42 = vpop.f32.mrb[5].mxu0 }
 0x3d0   :  { %v632_v22 = vpop.f32.mrb[6].mxu0 }
 0x3d1   :  { %v2554_v23 = vpop.f32.mrb[7].mxu0 }
 0x3d6   :  { %v2571_v24 = vpop.f32.mrb[8].mxu0 }
 0x3d7   :  { %v742_v25 = vpop.f32.mrb[9].mxu0  ;;  %v759_v28 = vmul.f32 3.0, %v2571_v24 }
 0x3d8   :  { %v757_v26 = vmul.f32 3.0, %v742_v25  ;;  %v2572_v27 = vpop.f32.mrb[10].mxu0  ;;  %v3251_v25 = vld [vmem:[%s3715_s10 + $0x10] sm:$0xff]  }
 0x3d9   :  { %v745_v29 = vpop.f32.mrb[11].mxu0  ;;  %v760_v34 = vmul.f32 3.0, %v2572_v27  ;;  %v763_v43 = vadd.f32 1.0, %v759_v28 }
 0x3da   :  { %v761_v30 = vadd.f32 1.0, %v757_v26  ;;  %v758_v32 = vmul.f32 3.0, %v745_v29 }
 0x3db   :  { %v764_v46 = vadd.f32 1.0, %v760_v34 }
 0x3dc   :  { %v3133_v36 = vmul.f32 %v761_v30, %v629_v37  ;;  %v762_v40 = vadd.f32 1.0, %v758_v32  ;;  %v2337_v30 = vunpack.c.l.bf16 %v3251_v25 }
 0x3de   :  { %v3135_v44 = vmul.f32 %v762_v40, %v632_v22  ;;  %769 = vrot.lane.b32.xlu0 %v3133_v36, %s2848_s24  ;;  %v673_v45 = vpop.f32.mrb[24].mxu1  ;;  %v3244_v22 = vld [vmem:[%s3715_s10 + $0x18] sm:$0xff]   ;;  %v2338_v40 = vunpack.c.h.bf16 %v3251_v25 }
 0x3df   :  { %v3139_v47 = vmul.f32 %v763_v43, %v673_v45  ;;  %v2565_v48 = vpop.f32.mrb[25].mxu1  ;;  %v2341_v28 = vunpack.c.l.bf16 %v3244_v22  ;;  %v2342_v32 = vunpack.c.h.bf16 %v3244_v22 }
 0x3e0   :  { %771 = vrot.lane.b32.xlu1 %v3135_v44, %s2848_s24  ;;  %v676_v49 = vpop.f32.mrb[26].mxu1 }
 0x3e1   :  { %v3143_v50 = vmul.f32 %v764_v46, %v676_v49  ;;  %v2566_v51 = vpop.f32.mrb[27].mxu1 }
 0x3e2   :  { %773 = vrot.lane.b32.xlu0 %v3139_v47, %s2848_s24 }
 0x3e4   :  { %775 = vrot.lane.b32.xlu1 %v3143_v50, %s2848_s24 }
 0x3e6   :  { %v2597_v20 = vpop.f32.mrb[28].mxu1 }
 0x3e7   :  { %v1254_v31 = vmul.f32 %v2597_v20, %v2333_v13  ;;  %v1060_v35 = vpop.f32.mrb[29].mxu1 }
 0x3e8   :  { %v1252_v37 = vmul.f32 %v2329_v14, %v1060_v35  ;;  %v2598_v42 = vpop.f32.mrb[30].mxu1 }
 0x3e9   :  { %v1255_v23 = vmul.f32 %v2598_v42, %v2334_v15  ;;  %v1063_v24 = vpop.f32.mrb[31].mxu1 }
 0x3ea   :  { %v1253_v26 = vmul.f32 %v2330_v21, %v1063_v24 }
 0x3eb   :  { %v1285_v27 = vpack.c.bf16 %v1255_v23, %v1254_v31 }
 0x3ec   :  { %v1284_v29 = vpack.c.bf16 %v1253_v26, %v1252_v37 }
 0x3ee   :  { %v2601_v34 = vpop.f32.mrb[32].mxu1  ;;  %2630 = vmatpush3.bf16.msra.mxu1 %v1284_v29 }
 0x3ef   :  { %v1258_v43 = vmul.f32 %v2601_v34, %v2341_v28  ;;  %v1076_v45 = vpop.f32.mrb[33].mxu1  ;;  %2631 = vmatprep.subr.bf16.mxu1 %v2846_v9 }
 0x3f0   :  { %v1256_v46 = vmul.f32 %v2337_v30, %v1076_v45  ;;  %v2602_v48 = vpop.f32.mrb[34].mxu1 }
 0x3f1   :  { %v1259_v49 = vmul.f32 %v2602_v48, %v2342_v32  ;;  %v1079_v51 = vpop.f32.mrb[35].mxu1 }
 0x3f2   :  { %2632 = vmatpush3.bf16.msra.mxu1 %v1285_v27  ;;  %v3296_v27 = vld [vmem:[%s3715_s10 + $0x30] sm:$0xff]  }
 0x3f3   :  { %2633 = vmatprep.subr.bf16.mxu1 %v2846_v9  ;;  %v2353_v34 = vunpack.c.l.bf16 %v3296_v27  ;;  %v2354_v45 = vunpack.c.h.bf16 %v3296_v27 }
 0x450   :  { %v770_v55 = vpop.permute.xlu0 %769 }
 0x451   :  { %v777_v57 = vmax.f32 %v3133_v36, %v770_v55  ;;  %v1257_v55 = vmul.f32 %v2338_v40, %v1079_v51 }
 0x452   :  { %v772_v59 = vpop.permute.xlu1 %771 }
 0x453   :  { %v778_v60 = vmax.f32 %v3135_v44, %v772_v59  ;;  %781 = vrot.lane.b32.xlu0 %v777_v57, %s2849_s30  ;;  %v1286_v59 = vpack.c.bf16 %v1257_v55, %v1256_v46 }
 0x454   :  { %v774_v61 = vpop.permute.xlu0 %773 }
 0x455   :  { %v779_v62 = vmax.f32 %v3139_v47, %v774_v61  ;;  %783 = vrot.lane.b32.xlu1 %v778_v60, %s2849_s30  ;;  %v2605_v61 = vpop.f32.mrb[36].mxu1  ;;  %2634 = vmatpush3.bf16.msra.mxu1 %v1286_v59  ;;  %v3309_v59 = vld [vmem:[%s3715_s10 + $0x38] sm:$0xff]  }
 0x456   :  { %v776_v63 = vpop.permute.xlu1 %775  ;;  %2635 = vmatprep.subr.bf16.mxu1 %v2846_v9 }
 0x457   :  { %v780_v0 = vmax.f32 %v3143_v50, %v776_v63  ;;  %785 = vrot.lane.b32.xlu0 %v779_v62, %s2849_s30  ;;  %v3277_v63 = vld [vmem:[%s3715_s10 + $0x20] sm:$0xff]  }
 0x459   :  { %787 = vrot.lane.b32.xlu1 %v780_v0, %s2849_s30 }
 0x4c5   :  { %v782_v5 = vpop.permute.xlu0 %781 }
 0x4c6   :  { %v3211_v6 = vmax.f32 %v777_v57, %v782_v5  ;;  %v1287_v57 = vpack.c.bf16 %v1259_v49, %v1258_v43  ;;  %v2345_v5 = vunpack.c.l.bf16 %v3277_v63 }
 0x4c7   :  { %v784_v7 = vpop.permute.xlu1 %783 }
 0x4c8   :  { %v3213_v8 = vmax.f32 %v778_v60, %v784_v7  ;;  %793 = vrot.lane.b32.xlu0 %v3211_v6, %s2850_s23  ;;  %v3272_v60 = vld [vmem:[%s3715_s10 + $0x28] sm:$0xff]   ;;  %2636 = vmatpush3.bf16.msra.mxu1 %v1287_v57  ;;  %s2853_s10 = smov [#allocation2]  }
 0x4c9   :  { %v786_v10 = vpop.permute.xlu0 %785  ;;  %2637 = vmatprep.subr.bf16.mxu1 %v2846_v9  ;;  %v2350_v37 = vunpack.c.h.bf16 %v3272_v60  ;;  %s2197_s2 = sshll.u32 %s2853_s10, 4  ;;  %s2198_s2 = int_to_ptr.vmem [resolvable:$true] %s2197_s2 }
 0x4ca   :  { %v3216_v11 = vmax.f32 %v779_v62, %v786_v10  ;;  %795 = vrot.lane.b32.xlu1 %v3213_v8, %s2850_s23  ;;  %v1092_v62 = vpop.f32.mrb[37].mxu1  ;;  %v2346_v10 = vunpack.c.h.bf16 %v3277_v63  ;;  %p2826_p1 = scmp.lt.s32.totalorder %s2198_s2, %s2198_s2 }
 0x4cb   :  { %v788_v33 = vpop.permute.xlu1 %787  ;;  %v2606_v7 = vpop.f32.mrb[38].mxu1  ;;  %v1260_v20 = vmul.f32 %v2345_v5, %v1092_v62  ;;  %v2358_v62 = vunpack.c.h.bf16 %v3309_v59 }
 0x4cc   :  { %v3219_v39 = vmax.f32 %v780_v0, %v788_v33  ;;  %797 = vrot.lane.b32.xlu0 %v3216_v11, %s2850_s23  ;;  %v2349_v0 = vunpack.c.l.bf16 %v3272_v60  ;;  %v1095_v33 = vpop.f32.mrb[39].mxu1  ;;  %v1263_v23 = vmul.f32 %v2606_v7, %v2350_v37 }
 0x4cd   :  { %v1261_v31 = vmul.f32 %v2346_v10, %v1095_v33  ;;  %v2609_v24 = vpop.f32.mrb[40].mxu1 }
 0x4ce   :  { %799 = vrot.lane.b32.xlu1 %v3219_v39, %s2850_s23  ;;  %v1262_v35 = vmul.f32 %v2605_v61, %v2349_v0  ;;  %v1108_v26 = vpop.f32.mrb[41].mxu1 }
 0x4cf   :  { %v1288_v42 = vpack.c.bf16 %v1261_v31, %v1260_v20  ;;  %v2610_v43 = vpop.f32.mrb[42].mxu1  ;;  %v1264_v51 = vmul.f32 %v2353_v34, %v1108_v26 }
 0x4d0   :  { %v1289_v29 = vpack.c.bf16 %v1263_v23, %v1262_v35  ;;  %v1111_v48 = vpop.f32.mrb[43].mxu1  ;;  %v1267_v35 = vmul.f32 %v2610_v43, %v2358_v62 }
 0x4d1   :  { %2638 = vmatpush3.bf16.msra.mxu1 %v1288_v42  ;;  %v1265_v55 = vmul.f32 %v2354_v45, %v1111_v48 }
 0x4d2   :  { %2639 = vmatprep.subr.bf16.mxu1 %v2846_v9 }
 0x4d3   :  { %v1290_v7 = vpack.c.bf16 %v1265_v55, %v1264_v51 }
 0x4d5   :  { %2640 = vmatpush3.bf16.msra.mxu1 %v1289_v29 }
 0x4d6   :  { %2641 = vmatprep.subr.bf16.mxu1 %v2846_v9 }
 0x4d9   :  { %2642 = vmatpush3.bf16.msra.mxu1 %v1290_v7 }
 0x4da   :  { %2643 = vmatprep.subr.bf16.mxu1 %v2846_v9 }
 0x53a   :  { %v794_v46 = vpop.permute.xlu0 %793 }
 0x53b   :  { %v801_v49 = vmax.f32 %v3211_v6, %v794_v46  ;;  %v2357_v6 = vunpack.c.l.bf16 %v3309_v59  ;;  %v2736_v59 = vld [vmem:[%s3711_s6 + $0x18] sm:$0xff]  }
 0x53c   :  { %v796_v57 = vpop.permute.xlu1 %795 }
 0x53d   :  { %v802_v61 = vmax.f32 %v3213_v8, %v796_v57  ;;  %805 = vrot.lane.b32.xlu0 %v801_v49, %s2851_s22  ;;  %v1266_v31 = vmul.f32 %v2609_v24, %v2357_v6 }
 0x53e   :  { %v798_v33 = vpop.permute.xlu0 %797 }
 0x53f   :  { %v803_v20 = vmax.f32 %v3216_v11, %v798_v33  ;;  %807 = vrot.lane.b32.xlu1 %v802_v61, %s2851_s22  ;;  %v1291_v23 = vpack.c.bf16 %v1267_v35, %v1266_v31 }
 0x540   :  { %v800_v42 = vpop.permute.xlu1 %799 }
 0x541   :  { %v804_v8 = vmax.f32 %v3219_v39, %v800_v42  ;;  %809 = vrot.lane.b32.xlu0 %v803_v20, %s2851_s22  ;;  %2644 = vmatpush3.bf16.msra.mxu1 %v1291_v23 }
 0x543   :  { %811 = vrot.lane.b32.xlu1 %v804_v8, %s2851_s22 }
 0x5af   :  { %v806_v26 = vpop.permute.xlu0 %805 }
 0x5b0   :  { %v813_v29 = vmax.f32 %v801_v49, %v806_v26 }
 0x5b1   :  { %v808_v11 = vpop.permute.xlu1 %807 }
 0x5b2   :  { %v817_v46 = vsub.f32 %v3133_v36, %v813_v29  ;;  %v814_v48 = vmax.f32 %v802_v61, %v808_v11 }
 0x5b3   :  { %v810_v24 = vpop.permute.xlu0 %809 }
 0x5b4   :  { %v821_v51 = vmul.f32 1.442695, %v817_v46  ;;  %v818_v43 = vsub.f32 %v3135_v44, %v814_v48  ;;  %v815_v55 = vmax.f32 %v803_v20, %v810_v24 }
 0x5b5   :  { %v812_v57 = vpop.permute.xlu1 %811 }
 0x5b6   :  { %v823_v7 = vmul.f32 1.442695, %v818_v43  ;;  %v819_v33 = vsub.f32 %v3139_v47, %v815_v55  ;;  %v816_v39 = vmax.f32 %v804_v8, %v812_v57  ;;  %2765 = vpow2.f32 %v821_v51  ;;  %v2734_v47 = vld [vmem:[%s3711_s6 + $0x8] sm:$0xff]  }
 0x5b8   :  { %2767 = vpow2.f32 %v823_v7  ;;  %v825_v31 = vmul.f32 1.442695, %v819_v33  ;;  %v820_v35 = vsub.f32 %v3143_v50, %v816_v39  ;;  %v2735_v50 = vld [vmem:[%s3711_s6 + $0x10] sm:$0xff]  }
 0x5ba   :  { %v827_v49 = vmul.f32 1.442695, %v820_v35  ;;  %2769 = vpow2.f32 %v825_v31 }
 0x5bc   :  { %2771 = vpow2.f32 %v827_v49 }
 0x5c0   :  { %v2766_v36 = vpop.eup %2765 }
 0x5c2   :  { %v2768_v61 = vpop.eup %2767 }
 0x5c3   :  { %v829_v42 = vpack.c.bf16 %v2768_v61, %v2766_v36 }
 0x5c4   :  { %v2770_v23 = vpop.eup %2769 }
 0x5c5   :  { %2589 = vmatprep.mubr.bf16.mxu0 %v829_v42  ;;  %2646 = vmatmul.mubr.bf16.vlgmr.msra.gmra.mrb[44].mxu1 %v829_v42 }
 0x5c6   :  { %v2772_v44 = vpop.eup %2771 }
 0x5c7   :  { %v3326_v20 = vpack.c.bf16 %v2772_v44, %v2770_v23 }
 0x5c9   :  { %2590 = vmatmul.mubr.bf16.vlgmr.msra.gmra.mrb[12].mxu0 %v3326_v20 }
 0x5ca   :  { %2612 = vmatpush3.bf16.msra.mxu0 %v3043_v38  ;;  %2613 = vmatprep.mubr.msk.bf16.mxu0 %vm428_vm1, %v3152_v52  ;;  %v2733_v38 = vld [vmem:[%s3711_s6] sm:$0xff]  }
 0x5cb   :  { %2649 = vmatprep.subr.bf16.mxu0 %v2846_v9  ;;  %2669 = vmatprep.subr.bf16.mxu1 %v2733_v38 }
 0x5cc   :  { %2670 = vmatpush3.bf16.msra.mxu1 %v2733_v38 }
 0x5cd   :  { %2671 = vmatprep.subr.bf16.mxu1 %v2734_v47 }
 0x5d0   :  { %2672 = vmatpush3.bf16.msra.mxu1 %v2734_v47 }
 0x5d1   :  { %2614 = vmatmul.mubr.msk.bf16.vlgmr.msra.gmra.mrb[16].mxu0 %vm428_vm1, %v3157_v53  ;;  %2673 = vmatprep.subr.bf16.mxu1 %v2735_v50 }
 0x5d2   :  { %2617 = vmatprep.mubr.msk.bf16.mxu0 %vm428_vm1, %v3166_v54 }
 0x5d4   :  { %2674 = vmatpush3.bf16.msra.mxu1 %v2735_v50 }
 0x5d5   :  { %2675 = vmatprep.subr.bf16.mxu1 %v2736_v59 }
 0x5d8   :  { %2676 = vmatpush3.bf16.msra.mxu1 %v2736_v59 }
 0x5d9   :  { %2618 = vmatmul.mubr.msk.bf16.gmra.mrb[20].mxu0 %vm428_vm1, %v3173_v56 }
 0x5da   :  { %2621 = vmatprep.mubr.msk.bf16.mxu0 %vm428_vm1, %v3179_v58 }
 0x5e1   :  { %2622 = vmatmul.mubr.msk.bf16.gmra.mrb[24].mxu0 %vm428_vm1, %v3191_v1 }
 0x5e2   :  { %2625 = vmatprep.mubr.msk.bf16.mxu0 %vm428_vm1, %v3196_v3 }
 0x5e9   :  { %2626 = vmatmul.mubr.msk.bf16.gmra.mrb[28].mxu0 %vm428_vm1, %v3205_v4 }
 0x5ea   :  { %2665 = vmatprep.mubr.msk.bf16.mxu0 %vm2847_vm2, %v2846_v9 }
 0x698   :  { %v1334_v52 = vpop.f32.mrb[44].mxu1 }
 0x699   :  { %v2647_v53 = vpop.f32.mrb[45].mxu1 }
 0x69a   :  { %v1337_v54 = vpop.f32.mrb[46].mxu1 }
 0x69b   :  { %v2648_v56 = vpop.f32.mrb[47].mxu1 }
 0x69c   :  { %v3358_v58 = vpop.f32.mrb[12].mxu0 }
 0x69d   :  { %v929_v1 = vpop.f32.mrb[13].mxu0 }
 0x69e   :  { %2773 = vrcp.f32 %v929_v1  ;;  %v3360_v3 = vpop.f32.mrb[14].mxu0 }
 0x69f   :  { %v932_v4 = vpop.f32.mrb[15].mxu0 }
 0x6a0   :  { %2775 = vrcp.f32 %v932_v4 }
 0x6a1   :  { %2777 = vrcp.f32 %v3358_v58 }
 0x6a2   :  { %2779 = vrcp.f32 %v3360_v3 }
 0x6a4   :  { %v2615_v8 = vpop.f32.mrb[16].mxu0 }
 0x6a5   :  { %v1157_v26 = vpop.f32.mrb[17].mxu0  ;;  %v1270_v11 = vmul.f32 %v2615_v8, %v2333_v13 }
 0x6a6   :  { %v2616_v29 = vpop.f32.mrb[18].mxu0  ;;  %v1268_v51 = vmul.f32 %v2329_v14, %v1157_v26 }
 0x6a7   :  { %v1271_v46 = vmul.f32 %v2616_v29, %v2334_v15  ;;  %v1160_v48 = vpop.f32.mrb[19].mxu0 }
 0x6a8   :  { %v2774_v24 = vpop.eup %2773  ;;  %v1269_v43 = vmul.f32 %v2330_v21, %v1160_v48 }
 0x6a9   :  { %v1293_v55 = vpack.c.bf16 %v1271_v46, %v1270_v11  ;;  %v1386_v57 = vmul.f32 %v2774_v24, %v1334_v52 }
 0x6aa   :  { %v2776_v7 = vpop.eup %2775  ;;  %v1292_v33 = vpack.c.bf16 %v1269_v43, %v1268_v51 }
 0x6ab   :  { %v1387_v39 = vmul.f32 %v2776_v7, %v1337_v54  ;;  %v2778_v27 = vpop.eup %2777 }
 0x6ac   :  { %v2619_v31 = vpop.f32.mrb[20].mxu0  ;;  %2650 = vmatpush3.bf16.msra.mxu0 %v1292_v33 }
 0x6ad   :  { %v1173_v35 = vpop.f32.mrb[21].mxu0  ;;  %2651 = vmatprep.subr.bf16.mxu0 %v2846_v9  ;;  %v1390_v41 = vpack.c.bf16 %v1387_v39, %v1386_v57  ;;  %v1274_v15 = vmul.f32 %v2619_v31, %v2341_v28 }
 0x6ae   :  { %v2620_v13 = vpop.f32.mrb[22].mxu0  ;;  %v1272_v21 = vmul.f32 %v2337_v30, %v1173_v35 }
 0x6af   :  { %v1275_v14 = vmul.f32 %v2620_v13, %v2342_v32  ;;  %v1176_v12 = vpop.f32.mrb[23].mxu0  ;;  %2677 = vmatprep.mubr.msk.bf16.mxu1 %vm130_vm0, %v1390_v41 }
 0x6b0   :  { %v1273_v49 = vmul.f32 %v2338_v40, %v1176_v12  ;;  %2652 = vmatpush3.bf16.msra.mxu0 %v1293_v55 }
 0x6b1   :  { %v1295_v36 = vpack.c.bf16 %v1275_v14, %v1274_v15  ;;  %2653 = vmatprep.subr.bf16.mxu0 %v2846_v9 }
 0x6b2   :  { %v1294_v61 = vpack.c.bf16 %v1273_v49, %v1272_v21 }
 0x6b4   :  { %v2623_v42 = vpop.f32.mrb[24].mxu0  ;;  %2654 = vmatpush3.bf16.msra.mxu0 %v1294_v61 }
 0x6b5   :  { %v1189_v28 = vpop.f32.mrb[25].mxu0  ;;  %2655 = vmatprep.subr.bf16.mxu0 %v2846_v9  ;;  %v1278_v32 = vmul.f32 %v2623_v42, %v2349_v0 }
 0x6b6   :  { %v2624_v22 = vpop.f32.mrb[26].mxu0  ;;  %v1276_v25 = vmul.f32 %v2345_v5, %v1189_v28 }
 0x6b7   :  { %v1279_v30 = vmul.f32 %v2624_v22, %v2350_v37  ;;  %v1192_v23 = vpop.f32.mrb[27].mxu0 }
 0x6b8   :  { %v1277_v40 = vmul.f32 %v2346_v10, %v1192_v23  ;;  %2656 = vmatpush3.bf16.msra.mxu0 %v1295_v36 }
 0x6b9   :  { %v1297_v44 = vpack.c.bf16 %v1279_v30, %v1278_v32  ;;  %2657 = vmatprep.subr.bf16.mxu0 %v2846_v9 }
 0x6ba   :  { %v1296_v38 = vpack.c.bf16 %v1277_v40, %v1276_v25 }
 0x6bc   :  { %v2627_v47 = vpop.f32.mrb[28].mxu0  ;;  %2658 = vmatpush3.bf16.msra.mxu0 %v1296_v38 }
 0x6bd   :  { %v1205_v50 = vpop.f32.mrb[29].mxu0  ;;  %2659 = vmatprep.subr.bf16.mxu0 %v2846_v9  ;;  %v1282_v60 = vmul.f32 %v2627_v47, %v2357_v6  ;;  %v2737_v47 = vld [vmem:[%s3720_s15] ss:$8 sps:$4 sm:$0xff]  }
 0x6be   :  { %v2628_v0 = vpop.f32.mrb[30].mxu0  ;;  %v1280_v63 = vmul.f32 %v2353_v34, %v1205_v50  ;;  %v2739_v50 = vld [vmem:[%s3720_s15 + $0x4] ss:$8 sps:$4 sm:$0xff]  }
 0x6bf   :  { %v1283_v5 = vmul.f32 %v2628_v0, %v2358_v62  ;;  %v1208_v37 = vpop.f32.mrb[31].mxu0  ;;  %v2780_v62 = vpop.eup %2779  ;;  %v2742_v0 = vld [vmem:[%s3720_s15 + $0x14] ss:$8 sps:$4 sm:$0xff]   ;;  %1647 = vmatprep.subr.bf16.mxu1 %v2739_v50 }
 0x6c0   :  { %v1281_v10 = vmul.f32 %v2354_v45, %v1208_v37  ;;  %2660 = vmatpush3.bf16.msra.mxu0 %v1297_v44  ;;  %v2743_v37 = vld [vmem:[%s3720_s15 + $0x20] ss:$8 sps:$4 sm:$0xff]  }
 0x6c1   :  { %v1299_v52 = vpack.c.bf16 %v1283_v5, %v1282_v60  ;;  %2661 = vmatprep.subr.bf16.mxu0 %v2846_v9  ;;  %v2740_v60 = vld [vmem:[%s3720_s15 + $0x10] ss:$8 sps:$4 sm:$0xff]   ;;  %v2745_v5 = vld [vmem:[%s3720_s15 + $0x24] ss:$8 sps:$4 sm:$0xff]  }
 0x6c2   :  { %v1298_v53 = vpack.c.bf16 %v1281_v10, %v1280_v63  ;;  %v2748_v63 = vld [vmem:[%s3720_s15 + $0x34] ss:$8 sps:$4 sm:$0xff]   ;;  %v2746_v10 = vld [vmem:[%s3720_s15 + $0x30] ss:$8 sps:$4 sm:$0xff]  }
 0x6c4   :  { %2662 = vmatpush3.bf16.msra.mxu0 %v1298_v53 }
 0x6c5   :  { %2663 = vmatprep.subr.bf16.mxu0 %v2846_v9 }
 0x6c8   :  { %2664 = vmatpush3.bf16.msra.mxu0 %v1299_v52 }
 0x6cb   :  { %2666 = vmatmul.mubr.bf16.vlgmr.msra.gmra.mrb[32].mxu0 %v3326_v20 }
 0x79e   :  { %v1375_v34 = vpop.f32.mrb[32].mxu0 }
 0x79f   :  { %v1388_v45 = vmul.f32 %v2778_v27, %v1375_v34  ;;  %v2667_v6 = vpop.f32.mrb[33].mxu0 }
 0x7a0   :  { %v1378_v54 = vpop.f32.mrb[34].mxu0 }
 0x7a1   :  { %v1389_v9 = vmul.f32 %v2780_v62, %v1378_v54  ;;  %v2668_v56 = vpop.f32.mrb[35].mxu0 }
 0x7a3   :  { %v1391_v1 = vpack.c.bf16 %v1389_v9, %v1388_v45 }
 0x7a5   :  { %2678 = vmatmul.mubr.msk.bf16.vlgmr.msra.gmra.mrb[48].mxu1 %vm130_vm0, %v1391_v1 }
 0x7a6   :  { %1679 = vmatprep.mubr.bf16.mxu1 %v2845_v2  ;;  %1648 = vmatpush1.bf16.msra.mxu1 %v2737_v47 }
 0x7a7   :  { %1649 = vmatprep.subr.bf16.mxu1 %v2742_v0 }
 0x7aa   :  { %1650 = vmatpush1.bf16.msra.mxu1 %v2740_v60 }
 0x7ab   :  { %1651 = vmatprep.subr.bf16.mxu1 %v2745_v5 }
 0x7ae   :  { %1652 = vmatpush1.bf16.msra.mxu1 %v2743_v37 }
 0x7af   :  { %1653 = vmatprep.subr.bf16.mxu1 %v2748_v63 }
 0x7b2   :  { %1654 = vmatpush1.bf16.msra.mxu1 %v2746_v10 }
 0x878   :  { %v2679_v20 = vpop.f32.mrb[48].mxu1 }
 0x879   :  { %v1481_v4 = vadd.f32 %v2679_v20, %v2999_v16  ;;  %v1464_v8 = vpop.f32.mrb[49].mxu1 }
 0x87a   :  { %v1479_v58 = vadd.f32 %v1464_v8, %v3004_v17  ;;  %v2680_v3 = vpop.f32.mrb[50].mxu1 }
 0x87b   :  { %1488 = vst.msk [vmem:[#allocation2 + $0x10] sm:$0xff] %vm130_vm0, %v1481_v4  ;;  %v1482_v26 = vadd.f32 %v2680_v3, %v3009_v18  ;;  %v1467_v29 = vpop.f32.mrb[51].mxu1  ;;  %v2280_v3 = vld [vmem:[%s3716_s11] ss:$0 sm:$0xff] }
 0x87c   :  { %1486 = vst.msk [vmem:[#allocation2] sm:$0xff] %vm130_vm0, %v1479_v58  ;;  %v1480_v11 = vadd.f32 %v1467_v29, %v3014_v19 }
 0x87d   :  { %1489 = vst.msk [vmem:[#allocation2 + $0x18] sm:$0xff] %vm130_vm0, %v1482_v26 }
 0x87e   :  { %1487 = vst.msk [vmem:[#allocation2 + $0x8] sm:$0xff] %vm130_vm0, %v1480_v11  ;;  %v2281_v11 = vld [vmem:[%s3717_s12] ss:$0 sm:$0xff] }
 0x882   :  { %v1496_v16 = vld [vmem:[#allocation2 + $0x10] sm:$0xff] }
 0x883   :  { %v1494_v46 = vld [vmem:[#allocation2] sm:$0xff]  ;;  %v1503_v18 = vsel %vm130_vm0, %v1496_v16, 0.0 }
 0x884   :  { %v1500_v24 = vsel %vm130_vm0, %v1494_v46, 0.0  ;;  %v1497_v51 = vld [vmem:[#allocation2 + $0x18] sm:$0xff] }
 0x885   :  { %v1495_v48 = vld [vmem:[#allocation2 + $0x8] sm:$0xff]  ;;  %v1505_v57 = vsel %vm130_vm0, %v1497_v51, 0.0 }
 0x886   :  { %v1501_v17 = vsel %vm130_vm0, %v1495_v48, 0.0 }
 0x887   :  { %v1502_v43 = vadd.f32 %v1501_v17, %v1500_v24 }
 0x889   :  { %v1504_v55 = vadd.f32 %v1503_v18, %v1502_v43 }
 0x88b   :  { %v1506_v7 = vadd.f32 %v1505_v57, %v1504_v55 }
 0x88d   :  { %1507 = vadd.xlane.f32.xlu0 %v1506_v7 }
 0x91a   :  { %v1508_v19 = vpop.xlane.xlu0 %1507 }
 0x91b   :  { %v1509_v33 = vrot.slane %v1508_v19, 4 }
 0x91d   :  { %v1510_v39 = vadd.f32 %v1509_v33, %v1508_v19  ;;  %v2749_v33 = vld [vmem:[%s3722_s17 + $0x40] sm:$0xff]  }
 0x91e   :  { %2461 = vmatprep.subr.bf16.mxu0 %v2749_v33 }
 0x91f   :  { %v1511_v31 = vrot.slane %v1510_v39, 2 }
 0x921   :  { %v1512_v35 = vadd.f32 %v1511_v31, %v1510_v39  ;;  %v2750_v39 = vld [vmem:[%s3722_s17] sm:$0xff]   ;;  %v2752_v31 = vld [vmem:[%s3722_s17 + $0x8] sm:$0xff]  }
 0x922   :  { %2462 = vmatpush3.bf16.msra.mxu0 %v2750_v39 }
 0x923   :  { %v1513_v41 = vrot.slane %v1512_v35, 1 }
 0x925   :  { %v1514_v13 = vadd.f32 %v1513_v41, %v1512_v35  ;;  %v2753_v35 = vld [vmem:[%s3722_s17 + $0x50] sm:$0xff]  }
 0x926   :  { %v2754_v41 = vld [vmem:[%s3722_s17 + $0x10] sm:$0xff]  }
 0x927   :  { %2681 = vpush %v1514_v13  ;;  %v2755_v13 = vld [vmem:[%s3722_s17 + $0x58] sm:$0xff]  }
 0x958   :  { %s2682_s6 = spop %2681 }
 0x959   :  { %v1516_v15 = vstv %s2682_s6 }
 0x95a   :  { %v1518_v14 = vmul.f32 0.00048828125, %v1516_v15  ;;  %v2756_v15 = vld [vmem:[%s3722_s17 + $0x18] sm:$0xff]  }
 0x95c   :  { %v1519_v12 = vsub.f32 %v1494_v46, %v1518_v14  ;;  %v1520_v21 = vsub.f32 %v1495_v48, %v1518_v14  ;;  %v1521_v49 = vsub.f32 %v1496_v16, %v1518_v14  ;;  %v1522_v36 = vsub.f32 %v1497_v51, %v1518_v14  ;;  %v2757_v14 = vld [vmem:[%s3722_s17 + $0x60] sm:$0xff]  }
 0x95e   :  { %v1523_v61 = vmul.f32 %v1519_v12, %v1519_v12  ;;  %v1524_v42 = vmul.f32 %v1520_v21, %v1520_v21  ;;  %v1525_v28 = vmul.f32 %v1521_v49, %v1521_v49  ;;  %v1526_v22 = vmul.f32 %v1522_v36, %v1522_v36 }
 0x960   :  { %v1527_v32 = vsel %vm130_vm0, %v1523_v61, 0.0  ;;  %v1528_v30 = vsel %vm130_vm0, %v1524_v42, 0.0  ;;  %v1530_v25 = vsel %vm130_vm0, %v1525_v28, 0.0  ;;  %v1532_v44 = vsel %vm130_vm0, %v1526_v22, 0.0  ;;  %v2762_v61 = vld [vmem:[%s3722_s17 + $0x30] sm:$0xff]   ;;  %v2763_v42 = vld [vmem:[%s3722_s17 + $0x78] sm:$0xff]  }
 0x961   :  { %v1529_v23 = vadd.f32 %v1528_v30, %v1527_v32  ;;  %v2764_v28 = vld [vmem:[%s3722_s17 + $0x38] sm:$0xff]   ;;  %v1591_v22 = vlaneseq }
 0x963   :  { %v1531_v40 = vadd.f32 %v1530_v25, %v1529_v23  ;;  %v1592_v32 = vshrl.u32 %v1591_v22, 7  ;;  %v1589_v23 = vld [vmem:[%s3721_s16] sm:$0x3] }
 0x965   :  { %v1533_v38 = vadd.f32 %v1532_v44, %v1531_v40  ;;  %v1593_v30 = vsub.s32 0, %v1592_v32  ;;  %v1597_v25 = vsub.s32 1, %v1592_v32 }
 0x967   :  { %1534 = vadd.xlane.f32.xlu1 %v1533_v38  ;;  %v1594_v40 = vrot.slane %v1589_v23, %v1593_v30  ;;  %v3522_v44 = vrot.slane %v1589_v23, %v1597_v25 }
 0x9f4   :  { %v1535_v52 = vpop.xlane.xlu1 %1534 }
 0x9f5   :  { %v1536_v53 = vrot.slane %v1535_v52, 4 }
 0x9f7   :  { %v1537_v59 = vadd.f32 %v1536_v53, %v1535_v52 }
 0x9f9   :  { %v1538_v27 = vrot.slane %v1537_v59, 2 }
 0x9fb   :  { %v1539_v34 = vadd.f32 %v1538_v27, %v1537_v59 }
 0x9fd   :  { %v1540_v45 = vrot.slane %v1539_v34, 1 }
 0x9ff   :  { %v1541_v6 = vadd.f32 %v1540_v45, %v1539_v34 }
 0xa01   :  { %2683 = vpush %v1541_v6 }
 0xa32   :  { %s2684_s25 = spop %2683 }
 0xa33   :  { %v1543_v62 = vstv %s2684_s25 }
 0xa34   :  { %v1544_v54 = vmul.f32 0.00048828125, %v1543_v62 }
 0xa36   :  { %2781 = vrsqrt.f32 %v1544_v54  ;;  %vm1547_vm3 = vcmp.eq.f32.partialorder %v1544_v54, inf  ;;  %v1550_v1 = vand.u32 2147483648, %v1544_v54  ;;  %vm1549_vm4 = vcmp.eq.f32.partialorder %v1544_v54, 0.0 }
 0xa40   :  { %v2782_v9 = vpop.eup %2781 }
 0xa41   :  { %v1546_v56 = vmul.f32 %v2782_v9, %v1544_v54 }
 0xa43   :  { %v1548_v20 = vsel %vm1547_vm3, %v1544_v54, %v1546_v56 }
 0xa44   :  { %v1551_v4 = vsel %vm1549_vm4, %v1550_v1, %v1548_v20 }
 0xa45   :  { %v1552_v8 = vadd.f32 1e-05, %v1551_v4 }
 0xa47   :  { %2783 = vrcp.f32 %v1552_v8 }
 0xa51   :  { %v2784_v58 = vpop.eup %2783 }
 0xa52   :  { %v1555_v26 = vmul.f32 %v2784_v58, %v1519_v12  ;;  %v1556_v29 = vmul.f32 %v2784_v58, %v1520_v21  ;;  %v1557_v16 = vmul.f32 %v2784_v58, %v1521_v49  ;;  %v1558_v24 = vmul.f32 %v2784_v58, %v1522_v36  ;;  %v2758_v12 = vld [vmem:[%s3722_s17 + $0x20] sm:$0xff]   ;;  %v2759_v21 = vld [vmem:[%s3722_s17 + $0x68] sm:$0xff]   ;;  %v2761_v36 = vld [vmem:[%s3722_s17 + $0x70] sm:$0xff]  }
 0xa53   :  { %v2760_v49 = vld [vmem:[%s3722_s17 + $0x28] sm:$0xff]  }
 0xa54   :  { %v1565_v46 = vmul.f32 %v2280_v3, %v1555_v26  ;;  %v1566_v48 = vmul.f32 %v2280_v3, %v1556_v29  ;;  %v1567_v18 = vmul.f32 %v2280_v3, %v1557_v16  ;;  %v1568_v55 = vmul.f32 %v2280_v3, %v1558_v24 }
 0xa56   :  { %v3456_v17 = vadd.f32 %v2281_v11, %v1565_v46  ;;  %v3458_v51 = vadd.f32 %v2281_v11, %v1566_v48  ;;  %v3464_v57 = vadd.f32 %v2281_v11, %v1567_v18  ;;  %v3466_v7 = vadd.f32 %v2281_v11, %v1568_v55 }
 0xa58   :  { %v1579_v43 = vpack.c.bf16 %v3458_v51, %v3456_v17  ;;  %v1580_v19 = vpack.c.bf16 %v3466_v7, %v3464_v57 }
 0xa5a   :  { %2290 = vmatmul.mubr.msk.bf16.vlgmr.msra.gmra.mrb[52].mxu1 %vm130_vm0, %v1579_v43 }
 0xa5b   :  { %1689 = vmatprep.mubr.bf16.mxu1 %v2845_v2  ;;  %v2751_v2 = vld [vmem:[%s3722_s17 + $0x48] sm:$0xff]  }
 0xa5c   :  { %2463 = vmatprep.subr.bf16.mxu0 %v2751_v2 }
 0xa5d   :  { %2464 = vmatpush3.bf16.msra.mxu0 %v2752_v31 }
 0xa5e   :  { %2465 = vmatprep.subr.bf16.mxu0 %v2753_v35 }
 0xa61   :  { %2466 = vmatpush3.bf16.msra.mxu0 %v2754_v41  ;;  %v2852_v41 = vmov -1.0  }
 0xa62   :  { %2291 = vmatmul.mubr.msk.bf16.gmra.mrb[56].mxu1 %vm130_vm0, %v1580_v19  ;;  %2467 = vmatprep.subr.bf16.mxu0 %v2755_v13 }
 0xa65   :  { %2468 = vmatpush3.bf16.msra.mxu0 %v2756_v15 }
 0xa66   :  { %2469 = vmatprep.subr.bf16.mxu0 %v2757_v14 }
 0xa69   :  { %2470 = vmatpush3.bf16.msra.mxu0 %v2758_v12 }
 0xa6a   :  { %2471 = vmatprep.subr.bf16.mxu0 %v2759_v21 }
 0xa6d   :  { %2472 = vmatpush3.bf16.msra.mxu0 %v2760_v49 }
 0xa6e   :  { %2473 = vmatprep.subr.bf16.mxu0 %v2761_v36 }
 0xa71   :  { %2474 = vmatpush3.bf16.msra.mxu0 %v2762_v61 }
 0xa72   :  { %2475 = vmatprep.subr.bf16.mxu0 %v2763_v42 }
 0xa75   :  { %2476 = vmatpush3.bf16.msra.mxu0 %v2764_v28 }
 0xb2d   :  { %v1681_v38 = vpop.f32.mrb[52].mxu1 }
 0xb2e   :  { %v1682_v47 = vadd.f32 %v1681_v38, %v1594_v40  ;;  %v1683_v50 = vpop.f32.mrb[53].mxu1 }
 0xb2f   :  { %v1684_v0 = vadd.f32 %v1683_v50, %v3522_v44  ;;  %v1685_v60 = vpop.f32.mrb[54].mxu1 }
 0xb30   :  { %v1708_v5 = vmul.f32 0.70710677, %v1682_v47  ;;  %v1686_v37 = vadd.f32 %v1685_v60, %v1594_v40  ;;  %v1687_v63 = vpop.f32.mrb[55].mxu1  ;;  %v3555_v2 = vmul.f32 0.5, %v1682_v47 }
 0xb31   :  { %v3525_v10 = vmul.f32 0.70710677, %v1684_v0  ;;  %v3530_v59 = vadd.f32 %v1687_v63, %v3522_v44  ;;  %v3557_v31 = vmul.f32 0.5, %v1684_v0 }
 0xb32   :  { %v1732_v52 = vand.u32 2147483647, %v1708_v5  ;;  %v3527_v53 = vmul.f32 0.70710677, %v1686_v37  ;;  %vm1716_vm5 = vcmp.ge.f32.partialorder %v1708_v5, 0.0  ;;  %v3563_v14 = vmul.f32 0.5, %v1686_v37 }
 0xb33   :  { %v1733_v27 = vand.u32 2147483647, %v3525_v10  ;;  %v3535_v54 = vmul.f32 0.70710677, %v3530_v59  ;;  %v3561_v13 = vsel %vm1716_vm5, 1.0, %v2852_v41  ;;  %vm1717_vm6 = vcmp.ge.f32.partialorder %v3525_v10, 0.0 }
 0xb34   :  { %v1740_v34 = vmul.f32 0.3275911, %v1732_v52  ;;  %v1734_v6 = vand.u32 2147483647, %v3527_v53  ;;  %v1844_v29 = vsub.f32 0.0, %v1732_v52  ;;  %vm1718_vm7 = vcmp.ge.f32.partialorder %v3527_v53, 0.0 }
 0xb35   :  { %v1741_v45 = vmul.f32 0.3275911, %v1733_v27  ;;  %v1691_v9 = vpop.f32.mrb[56].mxu1  ;;  %v1735_v4 = vand.u32 2147483647, %v3535_v54  ;;  %v1845_v24 = vsub.f32 0.0, %v1733_v27 }
 0xb36   :  { %v1748_v62 = vadd.f32 1.0, %v1740_v34  ;;  %v1742_v1 = vmul.f32 0.3275911, %v1734_v6  ;;  %v1693_v20 = vpop.f32.mrb[57].mxu1  ;;  %v3538_v11 = vadd.f32 %v1691_v9, %v1594_v40  ;;  %v1852_v55 = vmul.f32 %v1844_v29, %v1732_v52 }
 0xb37   :  { %v1749_v56 = vadd.f32 1.0, %v1741_v45  ;;  %v1695_v8 = vpop.f32.mrb[58].mxu1  ;;  %v1743_v26 = vmul.f32 0.3275911, %v1735_v4  ;;  %v3541_v46 = vadd.f32 %v1693_v20, %v3522_v44  ;;  %v1846_v19 = vsub.f32 0.0, %v1734_v6 }
 0xb38   :  { %2785 = vrcp.f32 %v1748_v62  ;;  %v1750_v58 = vadd.f32 1.0, %v1742_v1  ;;  %v1697_v3 = vpop.f32.mrb[59].mxu1  ;;  %v3543_v16 = vadd.f32 %v1695_v8, %v1594_v40  ;;  %v3546_v43 = vmul.f32 0.70710677, %v3538_v11 }
 0xb39   :  { %2787 = vrcp.f32 %v1749_v56  ;;  %v1751_v48 = vadd.f32 1.0, %v1743_v26  ;;  %v3549_v18 = vmul.f32 0.70710677, %v3541_v46  ;;  %v1853_v15 = vmul.f32 %v1845_v24, %v1733_v27 }
 0xb3a   :  { %2789 = vrcp.f32 %v1750_v58  ;;  %v1736_v33 = vand.u32 2147483647, %v3546_v43  ;;  %v3553_v39 = vmul.f32 0.70710677, %v3543_v16  ;;  %v1847_v49 = vsub.f32 0.0, %v1735_v4 }
 0xb3b   :  { %2791 = vrcp.f32 %v1751_v48  ;;  %v1737_v35 = vand.u32 2147483647, %v3549_v18  ;;  %v1860_v22 = vmul.f32 1.442695, %v1852_v55  ;;  %v1854_v32 = vmul.f32 %v1846_v19, %v1734_v6 }
 0xb3c   :  { %v1744_v12 = vmul.f32 0.3275911, %v1736_v33  ;;  %v3569_v61 = vand.u32 2147483647, %v3553_v39  ;;  %v3577_v38 = vadd.f32 %v1697_v3, %v3522_v44  ;;  %v1862_v50 = vmul.f32 1.442695, %v1853_v15 }
 0xb3d   :  { %v1745_v36 = vmul.f32 0.3275911, %v1737_v35  ;;  %v1855_v5 = vmul.f32 %v1847_v49, %v1735_v4  ;;  %v1848_v27 = vsub.f32 0.0, %v1736_v33  ;;  %v1864_v45 = vmul.f32 1.442695, %v1854_v32 }
 0xb3e   :  { %v1752_v30 = vadd.f32 1.0, %v1744_v12  ;;  %v1746_v40 = vmul.f32 0.3275911, %v3569_v61  ;;  %v1849_v6 = vsub.f32 0.0, %v1737_v35  ;;  %v3588_v62 = vmul.f32 0.70710677, %v3577_v38 }
 0xb3f   :  { %v1753_v25 = vadd.f32 1.0, %v1745_v36  ;;  %v3594_v20 = vsel %vm1717_vm6, 1.0, %v2852_v41  ;;  %v1866_v8 = vmul.f32 1.442695, %v1855_v5  ;;  %v1856_v29 = vmul.f32 %v1848_v27, %v1736_v33 }
 0xb40   :  { %2793 = vrcp.f32 %v1752_v30  ;;  %v1754_v37 = vadd.f32 1.0, %v1746_v40  ;;  %v3602_v24 = vsel %vm1718_vm7, 1.0, %v2852_v41  ;;  %v1857_v55 = vmul.f32 %v1849_v6, %v1737_v35 }
 0xb41   :  { %2795 = vrcp.f32 %v1753_v25  ;;  %v3605_v10 = vand.u32 2147483647, %v3588_v62  ;;  %v1850_v33 = vsub.f32 0.0, %v3569_v61  ;;  %vm1719_vm8 = vcmp.ge.f32.partialorder %v3535_v54, 0.0 }
 0xb42   :  { %v3565_v21 = vpop.eup %2785  ;;  %2797 = vpow2.f32 %v1860_v22  ;;  %v1868_v32 = vmul.f32 1.442695, %v1856_v29  ;;  %v1870_v40 = vmul.f32 1.442695, %v1857_v55  ;;  %vm1720_vm9 = vcmp.ge.f32.partialorder %v3546_v43, 0.0 }
 0xb43   :  { %v3571_v42 = vpop.eup %2787  ;;  %v1772_v28 = vmul.f32 1.0614054, %v3565_v21  ;;  %2799 = vrcp.f32 %v1754_v37  ;;  %v1747_v36 = vmul.f32 0.3275911, %v3605_v10  ;;  %vm1722_vm10 = vcmp.ge.f32.partialorder %v3553_v39, 0.0 }
 0xb44   :  { %v1773_v23 = vmul.f32 1.0614054, %v3571_v42  ;;  %v3580_v0 = vpop.eup %2789  ;;  %2801 = vpow2.f32 %v1862_v50  ;;  %vm1721_vm11 = vcmp.ge.f32.partialorder %v3549_v18, 0.0  ;;  %vm1723_vm12 = vcmp.ge.f32.partialorder %v3588_v62, 0.0 }
 0xb45   :  { %v1780_v47 = vadd.f32 -1.4531521, %v1772_v28  ;;  %v1774_v52 = vmul.f32 1.0614054, %v3580_v0  ;;  %v3584_v34 = vpop.eup %2791  ;;  %2803 = vpow2.f32 %v1864_v45  ;;  %v1705_v18 = vmul.f32 0.5, %v3541_v46 }
 0xb46   :  { %v1781_v60 = vadd.f32 -1.4531521, %v1773_v23  ;;  %v1775_v1 = vmul.f32 1.0614054, %v3584_v34  ;;  %2805 = vpow2.f32 %v1866_v8 }
 0xb47   :  { %v1788_v63 = vmul.f32 %v3565_v21, %v1780_v47  ;;  %v1782_v56 = vadd.f32 -1.4531521, %v1774_v52  ;;  %v1755_v47 = vadd.f32 1.0, %v1747_v36 }
 0xb48   :  { %v1789_v44 = vmul.f32 %v3571_v42, %v1781_v60  ;;  %v1783_v26 = vadd.f32 -1.4531521, %v1775_v1 }
 0xb49   :  { %v1796_v9 = vadd.f32 1.4214138, %v1788_v63  ;;  %v1790_v3 = vmul.f32 %v3580_v0, %v1782_v56  ;;  %2807 = vrcp.f32 %v1755_v47 }
 0xb4a   :  { %v1797_v4 = vadd.f32 1.4214138, %v1789_v44  ;;  %v1791_v12 = vmul.f32 %v3584_v34, %v1783_v26  ;;  %v3610_v28 = vpop.eup %2793  ;;  %v1858_v44 = vmul.f32 %v1850_v33, %v3569_v61  ;;  %2809 = vpow2.f32 %v1868_v32 }
 0xb4b   :  { %v1804_v58 = vmul.f32 %v3565_v21, %v1796_v9  ;;  %v1798_v15 = vadd.f32 1.4214138, %v1790_v3  ;;  %v3615_v30 = vpop.eup %2795  ;;  %v1776_v25 = vmul.f32 1.0614054, %v3610_v28 }
 0xb4c   :  { %v1805_v48 = vmul.f32 %v3571_v42, %v1797_v4  ;;  %v1799_v22 = vadd.f32 1.4214138, %v1791_v12  ;;  %v2798_v50 = vpop.eup %2797  ;;  %v1777_v63 = vmul.f32 1.0614054, %v3615_v30 }
 0xb4d   :  { %v1812_v19 = vadd.f32 -0.28449672, %v1804_v58  ;;  %v1806_v35 = vmul.f32 %v3580_v0, %v1798_v15  ;;  %v1784_v27 = vadd.f32 -1.4531521, %v1776_v25  ;;  %v3622_v45 = vpop.eup %2799  ;;  %v1872_v15 = vmul.f32 1.442695, %v1858_v44 }
 0xb4e   :  { %v1813_v49 = vadd.f32 -0.28449672, %v1805_v48  ;;  %v1807_v37 = vmul.f32 %v3584_v34, %v1799_v22  ;;  %v1785_v1 = vadd.f32 -1.4531521, %v1777_v63  ;;  %v2802_v4 = vpop.eup %2801  ;;  %v1778_v3 = vmul.f32 1.0614054, %v3622_v45 }
 0xb4f   :  { %v1820_v53 = vmul.f32 %v3565_v21, %v1812_v19  ;;  %v1814_v5 = vadd.f32 -0.28449672, %v1806_v35  ;;  %v1792_v58 = vmul.f32 %v3610_v28, %v1784_v27  ;;  %v2804_v12 = vpop.eup %2803  ;;  %2811 = vpow2.f32 %v1872_v15 }
 0xb50   :  { %v1821_v23 = vmul.f32 %v3571_v42, %v1813_v49  ;;  %v1815_v56 = vadd.f32 -0.28449672, %v1807_v37  ;;  %v1793_v48 = vmul.f32 %v3615_v30, %v1785_v1  ;;  %v1786_v19 = vadd.f32 -1.4531521, %v1778_v3 }
 0xb51   :  { %v1828_v60 = vadd.f32 0.2548296, %v1820_v53  ;;  %v1822_v9 = vmul.f32 %v3580_v0, %v1814_v5  ;;  %v2806_v53 = vpop.eup %2805  ;;  %2813 = vpow2.f32 %v1870_v40 }
 0xb52   :  { %v1829_v52 = vadd.f32 0.2548296, %v1821_v23  ;;  %v1823_v61 = vmul.f32 %v3584_v34, %v1815_v56  ;;  %v1801_v36 = vadd.f32 1.4214138, %v1793_v48  ;;  %v1794_v32 = vmul.f32 %v3622_v45, %v1786_v19 }
 0xb53   :  { %v1836_v6 = vmul.f32 %v3565_v21, %v1828_v60  ;;  %v1830_v29 = vadd.f32 0.2548296, %v1822_v9  ;;  %v1800_v21 = vadd.f32 1.4214138, %v1792_v58  ;;  %v1851_v23 = vsub.f32 0.0, %v3605_v10 }
 0xb54   :  { %v1837_v8 = vmul.f32 %v3571_v42, %v1829_v52  ;;  %v1831_v42 = vadd.f32 0.2548296, %v1823_v61  ;;  %v1809_v60 = vmul.f32 %v3615_v30, %v1801_v36  ;;  %v1802_v37 = vadd.f32 1.4214138, %v1794_v32 }
 0xb55   :  { %v1876_v26 = vmul.f32 %v2798_v50, %v1836_v6  ;;  %v1838_v33 = vmul.f32 %v3580_v0, %v1830_v29  ;;  %v1808_v22 = vmul.f32 %v3610_v28, %v1800_v21  ;;  %v1727_v0 = vsel %vm1719_vm8, 1.0, %v2852_v41  ;;  %v2808_v6 = vpop.eup %2807 }
 0xb56   :  { %v1877_v55 = vmul.f32 %v2802_v4, %v1837_v8  ;;  %v1839_v50 = vmul.f32 %v3584_v34, %v1831_v42  ;;  %v1817_v44 = vadd.f32 -0.28449672, %v1809_v60  ;;  %v1810_v34 = vmul.f32 %v3622_v45, %v1802_v37  ;;  %v2810_v8 = vpop.eup %2809 }
 0xb57   :  { %v1884_v49 = vsub.f32 1.0, %v1876_v26  ;;  %v1878_v47 = vmul.f32 %v2804_v12, %v1838_v33  ;;  %v1816_v5 = vadd.f32 -0.28449672, %v1808_v22  ;;  %v1859_v9 = vmul.f32 %v1851_v23, %v3605_v10 }
 0xb58   :  { %v1885_v35 = vsub.f32 1.0, %v1877_v55  ;;  %v1879_v27 = vmul.f32 %v2806_v53, %v1839_v50  ;;  %v1825_v4 = vmul.f32 %v3615_v30, %v1817_v44  ;;  %v1779_v3 = vmul.f32 1.0614054, %v2808_v6 }
 0xb59   :  { %v1892_v25 = vmul.f32 %v1884_v49, %v3561_v13  ;;  %v1886_v52 = vsub.f32 1.0, %v1878_v47  ;;  %v1824_v13 = vmul.f32 %v3610_v28, %v1816_v5  ;;  %v1703_v61 = vmul.f32 0.5, %v3530_v59 }
 0xb5a   :  { %v1893_v63 = vmul.f32 %v1885_v35, %v3594_v20  ;;  %v1887_v1 = vsub.f32 1.0, %v1879_v27  ;;  %v1818_v20 = vadd.f32 -0.28449672, %v1810_v34  ;;  %v1833_v55 = vadd.f32 0.2548296, %v1825_v4 }
 0xb5b   :  { %v1900_v56 = vadd.f32 1.0, %v1892_v25  ;;  %v1894_v54 = vmul.f32 %v1886_v52, %v3602_v24  ;;  %v1832_v58 = vadd.f32 0.2548296, %v1824_v13  ;;  %v1787_v21 = vadd.f32 -1.4531521, %v1779_v3 }
 0xb5c   :  { %v1901_v26 = vadd.f32 1.0, %v1893_v63  ;;  %v1895_v48 = vmul.f32 %v1887_v1, %v1727_v0  ;;  %v1826_v10 = vmul.f32 %v3622_v45, %v1818_v20  ;;  %v1874_v12 = vmul.f32 1.442695, %v1859_v9 }
 0xb5d   :  { %v1902_v29 = vadd.f32 1.0, %v1894_v54  ;;  %v1840_v40 = vmul.f32 %v3610_v28, %v1832_v58  ;;  %v1908_v24 = vmul.f32 %v1900_v56, %v3555_v2  ;;  %v1795_v42 = vmul.f32 %v2808_v6, %v1787_v21  ;;  %v2812_v28 = vpop.eup %2811 }
 0xb5e   :  { %v1903_v15 = vadd.f32 1.0, %v1895_v48  ;;  %v1834_v33 = vadd.f32 0.2548296, %v1826_v10  ;;  %v1909_v59 = vmul.f32 %v1901_v26, %v3557_v31  ;;  %v1841_v22 = vmul.f32 %v3615_v30, %v1833_v55  ;;  %v2814_v25 = vpop.eup %2813 }
 0xb5f   :  { %v1910_v19 = vmul.f32 %v1902_v29, %v3563_v14  ;;  %v1880_v49 = vmul.f32 %v2810_v8, %v1840_v40  ;;  %v1803_v2 = vadd.f32 1.4214138, %v1795_v42  ;;  %v1728_v14 = vsel %vm1720_vm9, 1.0, %v2852_v41 }
 0xb60   :  { %v1911_v53 = vmul.f32 %v1903_v15, %v1703_v61  ;;  %v1842_v32 = vmul.f32 %v3622_v45, %v1834_v33  ;;  %2815 = vpow2.f32 %v1874_v12  ;;  %v1881_v31 = vmul.f32 %v2814_v25, %v1841_v22 }
 0xb61   :  { %v1916_v36 = vpack.c.bf16 %v1910_v19, %v1908_v24  ;;  %v1888_v35 = vsub.f32 1.0, %v1880_v49  ;;  %v1811_v50 = vmul.f32 %v2808_v6, %v1803_v2  ;;  %v1730_v30 = vsel %vm1722_vm10, 1.0, %v2852_v41 }
 0xb62   :  { %v1917_v23 = vpack.c.bf16 %v1911_v53, %v1909_v59  ;;  %v1882_v47 = vmul.f32 %v2812_v28, %v1842_v32  ;;  %v1704_v63 = vmul.f32 0.5, %v3538_v11  ;;  %v1706_v52 = vmul.f32 0.5, %v3543_v16 }
 0xb63   :  { %v1896_v43 = vmul.f32 %v1888_v35, %v1728_v14  ;;  %v1819_v0 = vadd.f32 -0.28449672, %v1811_v50  ;;  %v1889_v27 = vsub.f32 1.0, %v1881_v31  ;;  %v1729_v54 = vsel %vm1721_vm11, 1.0, %v2852_v41 }
 0xb64   :  { %2087 = vmatprep.mubr.bf16.mxu0 %v1917_v23  ;;  %v1890_v60 = vsub.f32 1.0, %v1882_v47  ;;  %v1731_v11 = vsel %vm1723_vm12, 1.0, %v2852_v41  ;;  %v1707_v3 = vmul.f32 0.5, %v3577_v38  ;;  %v2292_v41 = vld [vmem:[%s3723_s18] ss:$0 sm:$0xff] }
 0xb65   :  { %2088 = vmatmul.mubr.bf16.vlgmr.msra.gmra.mrb[36].mxu0 %v1916_v36  ;;  %v1904_v5 = vadd.f32 1.0, %v1896_v43  ;;  %v1827_v37 = vmul.f32 %v2808_v6, %v1819_v0  ;;  %v1897_v1 = vmul.f32 %v1889_v27, %v1729_v54 }
 0xb66   :  { %v1898_v45 = vmul.f32 %v1890_v60, %v1730_v30 }
 0xb67   :  { %v1835_v44 = vadd.f32 0.2548296, %v1827_v37  ;;  %v1912_v13 = vmul.f32 %v1904_v5, %v1704_v63  ;;  %v1905_v16 = vadd.f32 1.0, %v1897_v1 }
 0xb68   :  { %v1906_v39 = vadd.f32 1.0, %v1898_v45 }
 0xb69   :  { %v1843_v9 = vmul.f32 %v2808_v6, %v1835_v44  ;;  %v1913_v29 = vmul.f32 %v1905_v16, %v1705_v18 }
 0xb6a   :  { %v1914_v34 = vmul.f32 %v1906_v39, %v1706_v52  ;;  %v2816_v56 = vpop.eup %2815 }
 0xb6b   :  { %v1883_v4 = vmul.f32 %v2816_v56, %v1843_v9 }
 0xb6c   :  { %v1918_v8 = vpack.c.bf16 %v1914_v34, %v1912_v13 }
 0xb6d   :  { %v1891_v58 = vsub.f32 1.0, %v1883_v4 }
 0xb6f   :  { %v1899_v20 = vmul.f32 %v1891_v58, %v1731_v11 }
 0xb71   :  { %v1907_v26 = vadd.f32 1.0, %v1899_v20 }
 0xb73   :  { %v1915_v6 = vmul.f32 %v1907_v26, %v1707_v3 }
 0xb75   :  { %v1919_v61 = vpack.c.bf16 %v1915_v6, %v1913_v29 }
 0xb77   :  { %2095 = vmatprep.mubr.bf16.mxu0 %v1919_v61 }
 0xb78   :  { %2096 = vmatmul.mubr.bf16.gmra.mrb[40].mxu0 %v1918_v8 }
 0xc38   :  { %v2477_v48 = vpop.f32.mrb[36].mxu0 }
 0xc39   :  { %v2478_v40 = vpop.f32.mrb[37].mxu0 }
 0xc3a   :  { %v2479_v62 = vadd.f32 %v2478_v40, %v2477_v48  ;;  %v2480_v55 = vpop.f32.mrb[38].mxu0 }
 0xc3b   :  { %v2481_v10 = vpop.f32.mrb[39].mxu0 }
 0xc3c   :  { %v2482_v21 = vadd.f32 %v2481_v10, %v2480_v55  ;;  %v2090_v46 = vadd.f32 %v2479_v62, %v2292_v41  ;;  %v2309_v10 = vld [vmem:[%s3718_s13] ss:$0 sm:$0xff]  ;;  %s2821_s13 = scalar_lea.vmem %s2198_s2, 512 }
 0xc3d   :  { %p2822_p0 = scmp.ne.s32.totalorder %s2198_s2, %s2821_s13  ;;  %p2827_p2 = scmp.lt.s32.totalorder %s2821_s13, %s2821_s13 }
 0xc3e   :  { %v2093_v24 = vadd.f32 %v2482_v21, %v2292_v41  ;;  %v2104_v12 = vadd.f32 %v2090_v46, %v3456_v17 }
 0xc3f   :  { %p2828_p3 = por %p2827_p2, %p2826_p1 }
 0xc40   :  { %v2105_v38 = vadd.f32 %v2093_v24, %v3458_v51  ;;  %v2110_v22 = vsel %vm130_vm0, %v2104_v12, 0.0 }
 0xc41   :  { %p2829_p4 = pnand %p2828_p3, %p2822_p0 }
 0xc42   :  { %v2111_v53 = vsel %vm130_vm0, %v2105_v38, 0.0 }
 0xc43   :  { %v2112_v32 = vadd.f32 %v2111_v53, %v2110_v22 }
 0xc4b   :  { %v2483_v19 = vpop.f32.mrb[40].mxu0 }
 0xc4c   :  { %v2484_v15 = vpop.f32.mrb[41].mxu0 }
 0xc4d   :  { %v2485_v49 = vadd.f32 %v2484_v15, %v2483_v19  ;;  %v2486_v33 = vpop.f32.mrb[42].mxu0 }
 0xc4e   :  { %v2487_v42 = vpop.f32.mrb[43].mxu0 }
 0xc4f   :  { %v2098_v59 = vadd.f32 %v2485_v49, %v2292_v41  ;;  %v2488_v36 = vadd.f32 %v2487_v42, %v2486_v33 }
 0xc51   :  { %v2106_v28 = vadd.f32 %v2098_v59, %v3464_v57  ;;  %v2101_v35 = vadd.f32 %v2488_v36, %v2292_v41 }
 0xc53   :  { %v2107_v2 = vadd.f32 %v2101_v35, %v3466_v7  ;;  %v2113_v51 = vsel %vm130_vm0, %v2106_v28, 0.0 }
 0xc54   :  { %v2114_v14 = vadd.f32 %v2113_v51, %v2112_v32 }
 0xc55   :  { %v2115_v17 = vsel %vm130_vm0, %v2107_v2, 0.0 }
 0xc56   :  { %v2116_v23 = vadd.f32 %v2115_v17, %v2114_v14 }
 0xc58   :  { %2117 = vadd.xlane.f32.xlu0 %v2116_v23 }
 0xce5   :  { %v2118_v25 = vpop.xlane.xlu0 %2117 }
 0xce6   :  { %v2119_v43 = vrot.slane %v2118_v25, 4 }
 0xce8   :  { %v2120_v47 = vadd.f32 %v2119_v43, %v2118_v25 }
 0xcea   :  { %v2121_v50 = vrot.slane %v2120_v47, 2 }
 0xcec   :  { %v2122_v31 = vadd.f32 %v2121_v50, %v2120_v47 }
 0xcee   :  { %v2123_v60 = vrot.slane %v2122_v31, 1 }
 0xcf0   :  { %v2124_v57 = vadd.f32 %v2123_v60, %v2122_v31 }
 0xcf2   :  { %2685 = vpush %v2124_v57 }
 0xd23   :  { %s2686_s18 = spop %2685 }
 0xd24   :  { %v2126_v0 = vstv %s2686_s18 }
 0xd25   :  { %v2127_v30 = vmul.f32 0.00048828125, %v2126_v0 }
 0xd27   :  { %v2128_v5 = vsub.f32 %v2104_v12, %v2127_v30  ;;  %v2129_v7 = vsub.f32 %v2105_v38, %v2127_v30  ;;  %v2130_v45 = vsub.f32 %v2106_v28, %v2127_v30  ;;  %v2131_v37 = vsub.f32 %v2107_v2, %v2127_v30  ;;  %v2310_v38 = vld [vmem:[%s3719_s14] ss:$0 sm:$0xff] }
 0xd29   :  { %v2132_v63 = vmul.f32 %v2128_v5, %v2128_v5  ;;  %v2133_v52 = vmul.f32 %v2129_v7, %v2129_v7  ;;  %v2134_v27 = vmul.f32 %v2130_v45, %v2130_v45  ;;  %v2135_v39 = vmul.f32 %v2131_v37, %v2131_v37 }
 0xd2b   :  { %v2136_v44 = vsel %vm130_vm0, %v2132_v63, 0.0  ;;  %v2137_v13 = vsel %vm130_vm0, %v2133_v52, 0.0  ;;  %v2139_v9 = vsel %vm130_vm0, %v2134_v27, 0.0  ;;  %v2141_v54 = vsel %vm130_vm0, %v2135_v39, 0.0 }
 0xd2c   :  { %v2138_v34 = vadd.f32 %v2137_v13, %v2136_v44 }
 0xd2e   :  { %v2140_v56 = vadd.f32 %v2139_v9, %v2138_v34 }
 0xd30   :  { %v2142_v1 = vadd.f32 %v2141_v54, %v2140_v56 }
 0xd32   :  { %2143 = vadd.xlane.f32.xlu0 %v2142_v1 }
 0xdbf   :  { %v2144_v4 = vpop.xlane.xlu0 %2143 }
 0xdc0   :  { %v2145_v8 = vrot.slane %v2144_v4, 4 }
 0xdc2   :  { %v2146_v58 = vadd.f32 %v2145_v8, %v2144_v4 }
 0xdc4   :  { %v2147_v11 = vrot.slane %v2146_v58, 2 }
 0xdc6   :  { %v2148_v16 = vadd.f32 %v2147_v11, %v2146_v58 }
 0xdc8   :  { %v2149_v20 = vrot.slane %v2148_v16, 1 }
 0xdca   :  { %v2150_v18 = vadd.f32 %v2149_v20, %v2148_v16 }
 0xdcc   :  { %2687 = vpush %v2150_v18 }
 0xdfd   :  { %s2688_s21 = spop %2687 }
 0xdfe   :  { %v2152_v3 = vstv %s2688_s21 }
 0xdff   :  { %v2153_v26 = vmul.f32 0.00048828125, %v2152_v3 }
 0xe01   :  { %2817 = vrsqrt.f32 %v2153_v26  ;;  %vm2156_vm13 = vcmp.eq.f32.partialorder %v2153_v26, inf  ;;  %v2159_v61 = vand.u32 2147483648, %v2153_v26  ;;  %vm2158_vm14 = vcmp.eq.f32.partialorder %v2153_v26, 0.0 }
 0xe0b   :  { %v2818_v29 = vpop.eup %2817 }
 0xe0c   :  { %v2155_v6 = vmul.f32 %v2818_v29, %v2153_v26 }
 0xe0e   :  { %v2157_v48 = vsel %vm2156_vm13, %v2153_v26, %v2155_v6 }
 0xe0f   :  { %v2160_v40 = vsel %vm2158_vm14, %v2159_v61, %v2157_v48 }
 0xe10   :  { %v2161_v62 = vadd.f32 1e-05, %v2160_v40 }
 0xe12   :  { %2819 = vrcp.f32 %v2161_v62 }
 0xe1c   :  { %v2820_v55 = vpop.eup %2819 }
 0xe1d   :  { %v2164_v21 = vmul.f32 %v2820_v55, %v2128_v5  ;;  %v2165_v41 = vmul.f32 %v2820_v55, %v2129_v7  ;;  %v2166_v24 = vmul.f32 %v2820_v55, %v2130_v45  ;;  %v2167_v46 = vmul.f32 %v2820_v55, %v2131_v37 }
 0xe1f   :  { %v2174_v19 = vmul.f32 %v2309_v10, %v2164_v21  ;;  %v2175_v15 = vmul.f32 %v2309_v10, %v2165_v41  ;;  %v2176_v12 = vmul.f32 %v2309_v10, %v2166_v24  ;;  %v2177_v49 = vmul.f32 %v2309_v10, %v2167_v46 }
 0xe21   :  { %v2184_v33 = vadd.f32 %v2310_v38, %v2174_v19  ;;  %v2185_v42 = vadd.f32 %v2310_v38, %v2175_v15  ;;  %v2186_v59 = vadd.f32 %v2310_v38, %v2176_v12  ;;  %v2187_v36 = vadd.f32 %v2310_v38, %v2177_v49 }
 0xe23   :  { %2188 = vst.msk [vmem:[#allocation2] sm:$0xff] %vm130_vm0, %v2184_v33  ;;  %2189 = vst.msk [vmem:[#allocation2 + $0x8] sm:$0xff] %vm130_vm0, %v2185_v42 }
 0xe24   :  { %2190 = vst.msk [vmem:[#allocation2 + $0x10] sm:$0xff] %vm130_vm0, %v2186_v59  ;;  %2191 = vst.msk [vmem:[#allocation2 + $0x18] sm:$0xff] %vm130_vm0, %v2187_v36 }
 0xe25   :  { %2832 = shalt.err (!%p2829_p4)
}
 0xe26   :  { %s2833_s8 = scalar_lea.hbm %s3724_s19, 512 }
 0xe27   :  { %p2834_p5 = scmp.ne.s32.totalorder %s3724_s19, %s2833_s8  ;;  %p2837_p6 = scmp.lt.u32.totalorder %s2833_s8, %s3724_s19 }
 0xe29   :  { %p2839_p7 = pnand %p2837_p6, %p2834_p5 }
 0xe2b   :  { %2842 = shalt.err (!%p2839_p7)
}
 0xe2c   :  { %s2854_s27 = smov 128  }
 0xe2d   :  { %2203 = dma.vmem_to_hbm [thread:$0]  %s2198_s2, 512, %s3724_s19, [#allocation3], %s2854_s27, %s2854_s27, %s2848_s24  }
 0xe2e   :  { %2843 = dma.done.wait [#allocation3], 512  }
 0xe2f   :  { %2844 = vsyncadd [#allocation3], 4294966784 }
 0xe30   :  { %2207 = vsyncpa [#allocation3], 1 }

</bundles_post_ra>
